<compile_context>
chip_gen: v5e
topology: v5e:2x2
jax: 0.10.0
libtpu: 0.0.40
codegen_flags: <defaults>
</compile_context>

<pallas_src>
import numpy as np
import jax
import jax.numpy as jnp
from jax.experimental import pallas as pl
from jax.experimental.pallas import tpu as pltpu


def _round_up(n, m):
    return ((n + m - 1) // m) * m


# ------------------------- fused Down kernel --------------------------------
def _down_fused_kernel(x_ref, w1_ref, w2_ref, s1_ref, b1_ref, s2_ref, b2_ref,
                       ht_ref, o_ref, pbuf, mbuf):
    _, _, _, HO, WO, Cin = x_ref.shape
    Cmid = s1_ref.shape[1]
    Cout_p = o_ref.shape[2]

    # ---- 2x2 maxpool: four element-wise maxima on full (HO, WO, C) tiles (VPU only) ----
    pooled = jnp.maximum(jnp.maximum(x_ref[0, 0, 0], x_ref[0, 0, 1]),
                         jnp.maximum(x_ref[0, 1, 0], x_ref[0, 1, 1]))

    # ---- zero only the 1-pixel borders (interiors are fully overwritten each step) ----
    pbuf[0:1, :, :] = jnp.zeros((1, WO + 2, Cin), pbuf.dtype)
    pbuf[HO + 1:HO + 2, :, :] = jnp.zeros((1, WO + 2, Cin), pbuf.dtype)
    pbuf[:, 0:1, :] = jnp.zeros((HO + 2, 1, Cin), pbuf.dtype)
    pbuf[:, WO + 1:WO + 2, :] = jnp.zeros((HO + 2, 1, Cin), pbuf.dtype)
    pbuf[1:HO + 1, 1:WO + 1, :] = pooled

    mbuf[0:1, :, :] = jnp.zeros((1, WO + 2, Cmid), mbuf.dtype)
    mbuf[HO + 1:HO + 2, :, :] = jnp.zeros((1, WO + 2, Cmid), mbuf.dtype)
    mbuf[:, 0:1, :] = jnp.zeros((HO + 2, 1, Cmid), mbuf.dtype)
    mbuf[:, WO + 1:WO + 2, :] = jnp.zeros((HO + 2, 1, Cmid), mbuf.dtype)

    # ---- conv1: nine accumulating dots on shifted windows (no materialized im2col) ----
    xp = pbuf[...]                                        # (HO+2, WO+2, Cin)
    acc1 = jnp.zeros((HO * WO, Cmid), jnp.float32)
    for k in range(9):                                    # static unroll
        ky, kx = divmod(k, 3)
        tap = xp[ky:ky + HO, kx:kx + WO, :].reshape(HO * WO, Cin).astype(jnp.bfloat16)
        acc1 = acc1 + jnp.dot(tap, w1_ref[k], preferred_element_type=jnp.float32)
    # ReLU(BN) then per-batch time bias (matches PyTorch ordering)
    h1 = jnp.maximum(acc1 * s1_ref[...] + b1_ref[...], 0.0) + ht_ref[0]

    mbuf[1:HO + 1, 1:WO + 1, :] = h1.reshape(HO, WO, Cmid)

    # ---- conv2: same pattern on the VMEM-resident mid activation ----
    hp = mbuf[...]                                        # (HO+2, WO+2, Cmid)
    acc2 = jnp.zeros((HO * WO, Cout_p), jnp.float32)
    for k in range(9):
        ky, kx = divmod(k, 3)
        tap = hp[ky:ky + HO, kx:kx + WO, :].reshape(HO * WO, Cmid).astype(jnp.bfloat16)
        acc2 = acc2 + jnp.dot(tap, w2_ref[k], preferred_element_type=jnp.float32)
    y = jnp.maximum(acc2 * s2_ref[...] + b2_ref[...], 0.0)

    o_ref[...] = y.reshape(1, HO * WO, Cout_p).astype(o_ref.dtype)


# ----------------------------- Down.forward ---------------------------------
def down_forward(x_nchw, t, P):
    B, Cin, H, W = x_nchw.shape
    HO, WO = H // 2, W // 2
    Cmid = P["w1"].shape[-1]
    Cout = P["w2"].shape[-1]
    # Gate lane padding: only pad when Cout >= 128 (pad is then free); for small Cout
    # keep the true width (masked store beats 16x output traffic + a wrapper slice pass).
    Cout_p = _round_up(Cout, 128) if Cout >= 128 else Cout

    # Hoisted time MLP (SiLU -> Linear): plain XLA, (B, Tch) x (Tch, Cmid).
    ht = (t * jax.nn.sigmoid(t)) @ P["wmlp"] + P["bmlp"]          # (B, Cmid)
    ht = ht.reshape(B, 1, Cmid)

    # NCHW -> pool-tap-major NHWC (B, 2, 2, HO, WO, Cin): one XLA layout copy, fused with
    # the mandatory transpose; the 2x2 pool becomes four full-vreg VPU maxima in-kernel.
    x_nhwc = jnp.transpose(x_nchw, (0, 2, 3, 1)).astype(jnp.float32)
    xt = jnp.transpose(x_nhwc.reshape(B, HO, 2, WO, 2, Cin), (0, 2, 4, 1, 3, 5))

    # Tap-major weights, bf16 MXU operands (f32 accumulation in the kernel).
    w1 = P["w1"].astype(jnp.bfloat16)                                   # (9, Cin, Cmid)
    w2 = jnp.pad(P["w2"], ((0, 0), (0, 0), (0, Cout_p - Cout))).astype(jnp.bfloat16)
    s2 = jnp.pad(P["scale2"], ((0, 0), (0, Cout_p - Cout)))
    b2 = jnp.pad(P["shift2"], ((0, 0), (0, Cout_p - Cout)))

    out = pl.pallas_call(
        _down_fused_kernel,
        out_shape=jax.ShapeDtypeStruct((B, HO * WO, Cout_p), jnp.float32),
        grid=(B,),
        in_specs=[
            pl.BlockSpec((1, 2, 2, HO, WO, Cin), lambda b: (b, 0, 0, 0, 0, 0)),
            pl.BlockSpec((9, Cin, Cmid), lambda b: (0, 0, 0)),    # conv1 weights
            pl.BlockSpec((9, Cmid, Cout_p), lambda b: (0, 0, 0)),  # conv2 weights
            pl.BlockSpec((1, Cmid), lambda b: (0, 0)),            # scale1
            pl.BlockSpec((1, Cmid), lambda b: (0, 0)),            # shift1
            pl.BlockSpec((1, Cout_p), lambda b: (0, 0)),          # scale2 (maybe padded)
            pl.BlockSpec((1, Cout_p), lambda b: (0, 0)),          # shift2 (maybe padded)
            pl.BlockSpec((1, 1, Cmid), lambda b: (b, 0, 0)),      # per-batch time bias
        ],
        out_specs=pl.BlockSpec((1, HO * WO, Cout_p), lambda b: (b, 0, 0)),
        scratch_shapes=[
            pltpu.VMEM((HO + 2, WO + 2, Cin), jnp.float32),   # padded pooled activation
            pltpu.VMEM((HO + 2, WO + 2, Cmid), jnp.float32),  # padded mid activation
        ],
        compiler_params=pltpu.CompilerParams(dimension_semantics=("parallel",)),
    )(xt, w1, w2, P["scale1"], P["shift1"], s2, b2, ht)

    y = out[:, :, :Cout].reshape(B, HO, WO, Cout)             # no-op slice when unpadded
    return jnp.transpose(y, (0, 3, 1, 2))                      # back to NCHW


# --------------------------- pure-JAX reference ------------------------------
def _ref_forward(x_nchw, t, P):
    x = jnp.transpose(x_nchw, (0, 2, 3, 1)).astype(jnp.float32)
    B, H, W, C = x.shape
    p = jnp.max(x.reshape(B, H // 2, 2, W // 2, 2, C), axis=(2, 4))

    def conv(z, w9):
        k = w9.reshape(3, 3, w9.shape[1], w9.shape[2])
        return jax.lax.conv_general_dilated(
            z, k, (1, 1), ((1, 1), (1, 1)),
            dimension_numbers=("NHWC", "HWIO", "NHWC"))

    hx = jnp.maximum(conv(p, P["w1"]) * P["scale1"] + P["shift1"], 0.0)
    st = t * jax.nn.sigmoid(t)
    ht = st @ P["wmlp"] + P["bmlp"]
    h = hx + ht[:, None, None, :]
    y = jnp.maximum(conv(h, P["w2"]) * P["scale2"] + P["shift2"], 0.0)
    return jnp.transpose(y, (0, 3, 1, 2))


# --------------------------------- main --------------------------------------
if __name__ == "__main__":
    B, Cin, H, W = 2, 4, 16, 16
    Cout = 8            # out_channels (mid_channels == out_channels)
    Tch = 32            # time_channels
    eps = 1e-5

    keys = jax.random.split(jax.random.PRNGKey(0), 16)
    w1 = 0.1 * jax.random.normal(keys[0], (9, Cin, Cout), jnp.float32)
    w2 = 0.1 * jax.random.normal(keys[1], (9, Cout, Cout), jnp.float32)
    wmlp = 0.1 * jax.random.normal(keys[2], (Tch, Cout), jnp.float32)
    bmlp = 0.1 * jax.random.normal(keys[3], (1, Cout), jnp.float32)

    def bn_params(kg, kb, km, kv, C):
        gamma = 1.0 + 0.1 * jax.random.normal(kg, (C,), jnp.float32)
        beta = 0.1 * jax.random.normal(kb, (C,), jnp.float32)
        mean = 0.1 * jax.random.normal(km, (C,), jnp.float32)
        var = 0.5 + jax.nn.sigmoid(jax.random.normal(kv, (C,), jnp.float32))
        scale = gamma / jnp.sqrt(var + eps)
        shift = beta - mean * scale
        return scale.reshape(1, C), shift.reshape(1, C)

    scale1, shift1 = bn_params(keys[4], keys[5], keys[6], keys[7], Cout)
    scale2, shift2 = bn_params(keys[8], keys[9], keys[10], keys[11], Cout)

    params = dict(w1=w1, w2=w2, wmlp=wmlp, bmlp=bmlp,
                  scale1=scale1, shift1=shift1, scale2=scale2, shift2=shift2)

    x = jax.random.normal(keys[12], (B, Cin, H, W), jnp.float32)   # NCHW, like PyTorch
    t = jax.random.normal(keys[13], (B, Tch), jnp.float32)

    y = jax.jit(down_forward)(x, t, params)
    y = jax.block_until_ready(y)
    assert y.shape == (B, Cout, H // 2, W // 2), y.shape

    y_ref = _ref_forward(x, t, params)
    # tolerance reflects bf16 MXU operands vs the f32 XLA reference
    np.testing.assert_allclose(np.asarray(y), np.asarray(y_ref),
                               rtol=5e-2, atol=5e-2)

    print("KERNEL_OK")
</pallas_src>

<mosaic_0001>
module attributes {stable_mosaic.version = 11 : i64} {
  func.func @_down_fused_kernel(%arg0: i32, %arg1: memref<1x2x2x8x8x4xf32, #tpu.memory_space<vmem>>, %arg2: memref<9x4x8xbf16, #tpu.memory_space<vmem>>, %arg3: memref<9x8x8xbf16, #tpu.memory_space<vmem>>, %arg4: memref<1x8xf32, #tpu.memory_space<vmem>>, %arg5: memref<1x8xf32, #tpu.memory_space<vmem>>, %arg6: memref<1x8xf32, #tpu.memory_space<vmem>>, %arg7: memref<1x8xf32, #tpu.memory_space<vmem>>, %arg8: memref<1x1x8xf32, #tpu.memory_space<vmem>>, %arg9: memref<1x64x8xf32, #tpu.memory_space<vmem>>, %arg10: memref<10x10x4xf32, #tpu.memory_space<vmem>>, %arg11: memref<10x10x8xf32, #tpu.memory_space<vmem>>) attributes {dimension_semantics = [#tpu.dimension_semantics<parallel>], iteration_bounds = array<i64: 2>, scalar_prefetch = 0 : i64, scratch_operands = 2 : i64, tpu.core_type = #tpu.core_type<tc>, window_params = [{transform_indices = @transform_0, window_bounds = array<i64: 1, 2, 2, 8, 8, 4>}, {pipeline_mode = #tpu.pipeline_mode<synchronous>, transform_indices = @transform_1, window_bounds = array<i64: 9, 4, 8>}, {pipeline_mode = #tpu.pipeline_mode<synchronous>, transform_indices = @transform_2, window_bounds = array<i64: 9, 8, 8>}, {pipeline_mode = #tpu.pipeline_mode<synchronous>, transform_indices = @transform_3, window_bounds = array<i64: 1, 8>}, {pipeline_mode = #tpu.pipeline_mode<synchronous>, transform_indices = @transform_4, window_bounds = array<i64: 1, 8>}, {pipeline_mode = #tpu.pipeline_mode<synchronous>, transform_indices = @transform_5, window_bounds = array<i64: 1, 8>}, {pipeline_mode = #tpu.pipeline_mode<synchronous>, transform_indices = @transform_6, window_bounds = array<i64: 1, 8>}, {transform_indices = @transform_7, window_bounds = array<i64: 1, 1, 8>}, {transform_indices = @transform_8, window_bounds = array<i64: 1, 64, 8>}]} {
    %c0 = arith.constant 0 : index
    %c0_0 = arith.constant 0 : index
    %c0_1 = arith.constant 0 : index
    %c0_2 = arith.constant 0 : index
    %c0_3 = arith.constant 0 : index
    %c0_4 = arith.constant 0 : index
    %0 = vector.load %arg1[%c0, %c0_0, %c0_1, %c0_2, %c0_3, %c0_4] : memref<1x2x2x8x8x4xf32, #tpu.memory_space<vmem>>, vector<1x1x1x8x8x4xf32>
    %1 = vector.shape_cast %0 : vector<1x1x1x8x8x4xf32> to vector<8x8x4xf32>
    %c0_5 = arith.constant 0 : index
    %c0_6 = arith.constant 0 : index
    %c1 = arith.constant 1 : index
    %c0_7 = arith.constant 0 : index
    %c0_8 = arith.constant 0 : index
    %c0_9 = arith.constant 0 : index
    %2 = vector.load %arg1[%c0_5, %c0_6, %c1, %c0_7, %c0_8, %c0_9] : memref<1x2x2x8x8x4xf32, #tpu.memory_space<vmem>>, vector<1x1x1x8x8x4xf32>
    %3 = vector.shape_cast %2 : vector<1x1x1x8x8x4xf32> to vector<8x8x4xf32>
    %4 = arith.maximumf %1, %3 : vector<8x8x4xf32>
    %c0_10 = arith.constant 0 : index
    %c1_11 = arith.constant 1 : index
    %c0_12 = arith.constant 0 : index
    %c0_13 = arith.constant 0 : index
    %c0_14 = arith.constant 0 : index
    %c0_15 = arith.constant 0 : index
    %5 = vector.load %arg1[%c0_10, %c1_11, %c0_12, %c0_13, %c0_14, %c0_15] : memref<1x2x2x8x8x4xf32, #tpu.memory_space<vmem>>, vector<1x1x1x8x8x4xf32>
    %6 = vector.shape_cast %5 : vector<1x1x1x8x8x4xf32> to vector<8x8x4xf32>
    %c0_16 = arith.constant 0 : index
    %c1_17 = arith.constant 1 : index
    %c1_18 = arith.constant 1 : index
    %c0_19 = arith.constant 0 : index
    %c0_20 = arith.constant 0 : index
    %c0_21 = arith.constant 0 : index
    %7 = vector.load %arg1[%c0_16, %c1_17, %c1_18, %c0_19, %c0_20, %c0_21] : memref<1x2x2x8x8x4xf32, #tpu.memory_space<vmem>>, vector<1x1x1x8x8x4xf32>
    %8 = vector.shape_cast %7 : vector<1x1x1x8x8x4xf32> to vector<8x8x4xf32>
    %9 = arith.maximumf %6, %8 : vector<8x8x4xf32>
    %10 = arith.maximumf %4, %9 : vector<8x8x4xf32>
    %cst = arith.constant 0.000000e+00 : f32
    %11 = vector.broadcast %cst : f32 to vector<1x10x4xf32>
    %c0_22 = arith.constant 0 : index
    %c0_23 = arith.constant 0 : index
    %c0_24 = arith.constant 0 : index
    %12 = vector.load %arg10[%c0_22, %c0_23, %c0_24] : memref<10x10x4xf32, #tpu.memory_space<vmem>>, vector<1x10x4xf32>
    tpu.vector_store %arg10[%c0_22, %c0_23, %c0_24], %11 {strides = array<i32>} : memref<10x10x4xf32, #tpu.memory_space<vmem>>, vector<1x10x4xf32>,
    %cst_25 = arith.constant 0.000000e+00 : f32
    %13 = vector.broadcast %cst_25 : f32 to vector<1x10x4xf32>
    %c9 = arith.constant 9 : index
    %c0_26 = arith.constant 0 : index
    %c0_27 = arith.constant 0 : index
    %14 = vector.load %arg10[%c9, %c0_26, %c0_27] : memref<10x10x4xf32, #tpu.memory_space<vmem>>, vector<1x10x4xf32>
    tpu.vector_store %arg10[%c9, %c0_26, %c0_27], %13 {strides = array<i32>} : memref<10x10x4xf32, #tpu.memory_space<vmem>>, vector<1x10x4xf32>,
    %cst_28 = arith.constant 0.000000e+00 : f32
    %15 = vector.broadcast %cst_28 : f32 to vector<10x1x4xf32>
    %c0_29 = arith.constant 0 : index
    %c0_30 = arith.constant 0 : index
    %c0_31 = arith.constant 0 : index
    %16 = vector.load %arg10[%c0_29, %c0_30, %c0_31] : memref<10x10x4xf32, #tpu.memory_space<vmem>>, vector<10x1x4xf32>
    tpu.vector_store %arg10[%c0_29, %c0_30, %c0_31], %15 {strides = array<i32>} : memref<10x10x4xf32, #tpu.memory_space<vmem>>, vector<10x1x4xf32>,
    %cst_32 = arith.constant 0.000000e+00 : f32
    %17 = vector.broadcast %cst_32 : f32 to vector<10x1x4xf32>
    %c0_33 = arith.constant 0 : index
    %c9_34 = arith.constant 9 : index
    %c0_35 = arith.constant 0 : index
    %18 = vector.load %arg10[%c0_33, %c9_34, %c0_35] : memref<10x10x4xf32, #tpu.memory_space<vmem>>, vector<10x1x4xf32>
    tpu.vector_store %arg10[%c0_33, %c9_34, %c0_35], %17 {strides = array<i32>} : memref<10x10x4xf32, #tpu.memory_space<vmem>>, vector<10x1x4xf32>,
    %c1_36 = arith.constant 1 : index
    %c1_37 = arith.constant 1 : index
    %c0_38 = arith.constant 0 : index
    %19 = vector.load %arg10[%c1_36, %c1_37, %c0_38] : memref<10x10x4xf32, #tpu.memory_space<vmem>>, vector<8x8x4xf32>
    tpu.vector_store %arg10[%c1_36, %c1_37, %c0_38], %10 {strides = array<i32>} : memref<10x10x4xf32, #tpu.memory_space<vmem>>, vector<8x8x4xf32>,
    %cst_39 = arith.constant 0.000000e+00 : f32
    %20 = vector.broadcast %cst_39 : f32 to vector<1x10x8xf32>
    %c0_40 = arith.constant 0 : index
    %c0_41 = arith.constant 0 : index
    %c0_42 = arith.constant 0 : index
    %21 = vector.load %arg11[%c0_40, %c0_41, %c0_42] : memref<10x10x8xf32, #tpu.memory_space<vmem>>, vector<1x10x8xf32>
    tpu.vector_store %arg11[%c0_40, %c0_41, %c0_42], %20 {strides = array<i32>} : memref<10x10x8xf32, #tpu.memory_space<vmem>>, vector<1x10x8xf32>,
    %cst_43 = arith.constant 0.000000e+00 : f32
    %22 = vector.broadcast %cst_43 : f32 to vector<1x10x8xf32>
    %c9_44 = arith.constant 9 : index
    %c0_45 = arith.constant 0 : index
    %c0_46 = arith.constant 0 : index
    %23 = vector.load %arg11[%c9_44, %c0_45, %c0_46] : memref<10x10x8xf32, #tpu.memory_space<vmem>>, vector<1x10x8xf32>
    tpu.vector_store %arg11[%c9_44, %c0_45, %c0_46], %22 {strides = array<i32>} : memref<10x10x8xf32, #tpu.memory_space<vmem>>, vector<1x10x8xf32>,
    %cst_47 = arith.constant 0.000000e+00 : f32
    %24 = vector.broadcast %cst_47 : f32 to vector<10x1x8xf32>
    %c0_48 = arith.constant 0 : index
    %c0_49 = arith.constant 0 : index
    %c0_50 = arith.constant 0 : index
    %25 = vector.load %arg11[%c0_48, %c0_49, %c0_50] : memref<10x10x8xf32, #tpu.memory_space<vmem>>, vector<10x1x8xf32>
    tpu.vector_store %arg11[%c0_48, %c0_49, %c0_50], %24 {strides = array<i32>} : memref<10x10x8xf32, #tpu.memory_space<vmem>>, vector<10x1x8xf32>,
    %cst_51 = arith.constant 0.000000e+00 : f32
    %26 = vector.broadcast %cst_51 : f32 to vector<10x1x8xf32>
    %c0_52 = arith.constant 0 : index
    %c9_53 = arith.constant 9 : index
    %c0_54 = arith.constant 0 : index
    %27 = vector.load %arg11[%c0_52, %c9_53, %c0_54] : memref<10x10x8xf32, #tpu.memory_space<vmem>>, vector<10x1x8xf32>
    tpu.vector_store %arg11[%c0_52, %c9_53, %c0_54], %26 {strides = array<i32>} : memref<10x10x8xf32, #tpu.memory_space<vmem>>, vector<10x1x8xf32>,
    %c0_55 = arith.constant 0 : index
    %c0_56 = arith.constant 0 : index
    %c0_57 = arith.constant 0 : index
    %28 = vector.load %arg10[%c0_55, %c0_56, %c0_57] : memref<10x10x4xf32, #tpu.memory_space<vmem>>, vector<10x10x4xf32>
    %cst_58 = arith.constant 0.000000e+00 : f32
    %29 = vector.broadcast %cst_58 : f32 to vector<64x8xf32>
    %30 = vector.extract_strided_slice %28 {offsets = [0, 0, 0], sizes = [8, 8, 4], strides = [1, 1, 1]} : vector<10x10x4xf32> to vector<8x8x4xf32>
    %31 = vector.shape_cast %30 : vector<8x8x4xf32> to vector<64x4xf32>
    %32 = arith.truncf %31 : vector<64x4xf32> to vector<64x4xbf16>
    %c0_59 = arith.constant 0 : index
    %c0_60 = arith.constant 0 : index
    %c0_61 = arith.constant 0 : index
    %33 = vector.load %arg2[%c0_59, %c0_60, %c0_61] : memref<9x4x8xbf16, #tpu.memory_space<vmem>>, vector<1x4x8xbf16>
    %34 = vector.shape_cast %33 : vector<1x4x8xbf16> to vector<4x8xbf16>
    %cst_62 = arith.constant dense<0.000000e+00> : vector<64x8xf32>
    %35 = tpu.matmul %32, %34, %cst_62 {dimension_numbers = #tpu.dot_dimension_numbers<[1], [0], [0], [1], [0, 0, 1, 1], [], []>} : vector<64x4xbf16>, vector<4x8xbf16>, vector<64x8xf32> -> vector<64x8xf32>
    %36 = arith.addf %29, %35 : vector<64x8xf32>
    %37 = vector.extract_strided_slice %28 {offsets = [0, 1, 0], sizes = [8, 8, 4], strides = [1, 1, 1]} : vector<10x10x4xf32> to vector<8x8x4xf32>
    %38 = vector.shape_cast %37 : vector<8x8x4xf32> to vector<64x4xf32>
    %39 = arith.truncf %38 : vector<64x4xf32> to vector<64x4xbf16>
    %c1_63 = arith.constant 1 : index
    %c0_64 = arith.constant 0 : index
    %c0_65 = arith.constant 0 : index
    %40 = vector.load %arg2[%c1_63, %c0_64, %c0_65] : memref<9x4x8xbf16, #tpu.memory_space<vmem>>, vector<1x4x8xbf16>
    %41 = vector.shape_cast %40 : vector<1x4x8xbf16> to vector<4x8xbf16>
    %cst_66 = arith.constant dense<0.000000e+00> : vector<64x8xf32>
    %42 = tpu.matmul %39, %41, %cst_66 {dimension_numbers = #tpu.dot_dimension_numbers<[1], [0], [0], [1], [0, 0, 1, 1], [], []>} : vector<64x4xbf16>, vector<4x8xbf16>, vector<64x8xf32> -> vector<64x8xf32>
    %43 = arith.addf %36, %42 : vector<64x8xf32>
    %44 = vector.extract_strided_slice %28 {offsets = [0, 2, 0], sizes = [8, 8, 4], strides = [1, 1, 1]} : vector<10x10x4xf32> to vector<8x8x4xf32>
    %45 = vector.shape_cast %44 : vector<8x8x4xf32> to vector<64x4xf32>
    %46 = arith.truncf %45 : vector<64x4xf32> to vector<64x4xbf16>
    %c2 = arith.constant 2 : index
    %c0_67 = arith.constant 0 : index
    %c0_68 = arith.constant 0 : index
    %47 = vector.load %arg2[%c2, %c0_67, %c0_68] : memref<9x4x8xbf16, #tpu.memory_space<vmem>>, vector<1x4x8xbf16>
    %48 = vector.shape_cast %47 : vector<1x4x8xbf16> to vector<4x8xbf16>
    %cst_69 = arith.constant dense<0.000000e+00> : vector<64x8xf32>
    %49 = tpu.matmul %46, %48, %cst_69 {dimension_numbers = #tpu.dot_dimension_numbers<[1], [0], [0], [1], [0, 0, 1, 1], [], []>} : vector<64x4xbf16>, vector<4x8xbf16>, vector<64x8xf32> -> vector<64x8xf32>
    %50 = arith.addf %43, %49 : vector<64x8xf32>
    %51 = vector.extract_strided_slice %28 {offsets = [1, 0, 0], sizes = [8, 8, 4], strides = [1, 1, 1]} : vector<10x10x4xf32> to vector<8x8x4xf32>
    %52 = vector.shape_cast %51 : vector<8x8x4xf32> to vector<64x4xf32>
    %53 = arith.truncf %52 : vector<64x4xf32> to vector<64x4xbf16>
    %c3 = arith.constant 3 : index
    %c0_70 = arith.constant 0 : index
    %c0_71 = arith.constant 0 : index
    %54 = vector.load %arg2[%c3, %c0_70, %c0_71] : memref<9x4x8xbf16, #tpu.memory_space<vmem>>, vector<1x4x8xbf16>
    %55 = vector.shape_cast %54 : vector<1x4x8xbf16> to vector<4x8xbf16>
    %cst_72 = arith.constant dense<0.000000e+00> : vector<64x8xf32>
    %56 = tpu.matmul %53, %55, %cst_72 {dimension_numbers = #tpu.dot_dimension_numbers<[1], [0], [0], [1], [0, 0, 1, 1], [], []>} : vector<64x4xbf16>, vector<4x8xbf16>, vector<64x8xf32> -> vector<64x8xf32>
    %57 = arith.addf %50, %56 : vector<64x8xf32>
    %58 = vector.extract_strided_slice %28 {offsets = [1, 1, 0], sizes = [8, 8, 4], strides = [1, 1, 1]} : vector<10x10x4xf32> to vector<8x8x4xf32>
    %59 = vector.shape_cast %58 : vector<8x8x4xf32> to vector<64x4xf32>
    %60 = arith.truncf %59 : vector<64x4xf32> to vector<64x4xbf16>
    %c4 = arith.constant 4 : index
    %c0_73 = arith.constant 0 : index
    %c0_74 = arith.constant 0 : index
    %61 = vector.load %arg2[%c4, %c0_73, %c0_74] : memref<9x4x8xbf16, #tpu.memory_space<vmem>>, vector<1x4x8xbf16>
    %62 = vector.shape_cast %61 : vector<1x4x8xbf16> to vector<4x8xbf16>
    %cst_75 = arith.constant dense<0.000000e+00> : vector<64x8xf32>
    %63 = tpu.matmul %60, %62, %cst_75 {dimension_numbers = #tpu.dot_dimension_numbers<[1], [0], [0], [1], [0, 0, 1, 1], [], []>} : vector<64x4xbf16>, vector<4x8xbf16>, vector<64x8xf32> -> vector<64x8xf32>
    %64 = arith.addf %57, %63 : vector<64x8xf32>
    %65 = vector.extract_strided_slice %28 {offsets = [1, 2, 0], sizes = [8, 8, 4], strides = [1, 1, 1]} : vector<10x10x4xf32> to vector<8x8x4xf32>
    %66 = vector.shape_cast %65 : vector<8x8x4xf32> to vector<64x4xf32>
    %67 = arith.truncf %66 : vector<64x4xf32> to vector<64x4xbf16>
    %c5 = arith.constant 5 : index
    %c0_76 = arith.constant 0 : index
    %c0_77 = arith.constant 0 : index
    %68 = vector.load %arg2[%c5, %c0_76, %c0_77] : memref<9x4x8xbf16, #tpu.memory_space<vmem>>, vector<1x4x8xbf16>
    %69 = vector.shape_cast %68 : vector<1x4x8xbf16> to vector<4x8xbf16>
    %cst_78 = arith.constant dense<0.000000e+00> : vector<64x8xf32>
    %70 = tpu.matmul %67, %69, %cst_78 {dimension_numbers = #tpu.dot_dimension_numbers<[1], [0], [0], [1], [0, 0, 1, 1], [], []>} : vector<64x4xbf16>, vector<4x8xbf16>, vector<64x8xf32> -> vector<64x8xf32>
    %71 = arith.addf %64, %70 : vector<64x8xf32>
    %72 = vector.extract_strided_slice %28 {offsets = [2, 0, 0], sizes = [8, 8, 4], strides = [1, 1, 1]} : vector<10x10x4xf32> to vector<8x8x4xf32>
    %73 = vector.shape_cast %72 : vector<8x8x4xf32> to vector<64x4xf32>
    %74 = arith.truncf %73 : vector<64x4xf32> to vector<64x4xbf16>
    %c6 = arith.constant 6 : index
    %c0_79 = arith.constant 0 : index
    %c0_80 = arith.constant 0 : index
    %75 = vector.load %arg2[%c6, %c0_79, %c0_80] : memref<9x4x8xbf16, #tpu.memory_space<vmem>>, vector<1x4x8xbf16>
    %76 = vector.shape_cast %75 : vector<1x4x8xbf16> to vector<4x8xbf16>
    %cst_81 = arith.constant dense<0.000000e+00> : vector<64x8xf32>
    %77 = tpu.matmul %74, %76, %cst_81 {dimension_numbers = #tpu.dot_dimension_numbers<[1], [0], [0], [1], [0, 0, 1, 1], [], []>} : vector<64x4xbf16>, vector<4x8xbf16>, vector<64x8xf32> -> vector<64x8xf32>
    %78 = arith.addf %71, %77 : vector<64x8xf32>
    %79 = vector.extract_strided_slice %28 {offsets = [2, 1, 0], sizes = [8, 8, 4], strides = [1, 1, 1]} : vector<10x10x4xf32> to vector<8x8x4xf32>
    %80 = vector.shape_cast %79 : vector<8x8x4xf32> to vector<64x4xf32>
    %81 = arith.truncf %80 : vector<64x4xf32> to vector<64x4xbf16>
    %c7 = arith.constant 7 : index
    %c0_82 = arith.constant 0 : index
    %c0_83 = arith.constant 0 : index
    %82 = vector.load %arg2[%c7, %c0_82, %c0_83] : memref<9x4x8xbf16, #tpu.memory_space<vmem>>, vector<1x4x8xbf16>
    %83 = vector.shape_cast %82 : vector<1x4x8xbf16> to vector<4x8xbf16>
    %cst_84 = arith.constant dense<0.000000e+00> : vector<64x8xf32>
    %84 = tpu.matmul %81, %83, %cst_84 {dimension_numbers = #tpu.dot_dimension_numbers<[1], [0], [0], [1], [0, 0, 1, 1], [], []>} : vector<64x4xbf16>, vector<4x8xbf16>, vector<64x8xf32> -> vector<64x8xf32>
    %85 = arith.addf %78, %84 : vector<64x8xf32>
    %86 = vector.extract_strided_slice %28 {offsets = [2, 2, 0], sizes = [8, 8, 4], strides = [1, 1, 1]} : vector<10x10x4xf32> to vector<8x8x4xf32>
    %87 = vector.shape_cast %86 : vector<8x8x4xf32> to vector<64x4xf32>
    %88 = arith.truncf %87 : vector<64x4xf32> to vector<64x4xbf16>
    %c8 = arith.constant 8 : index
    %c0_85 = arith.constant 0 : index
    %c0_86 = arith.constant 0 : index
    %89 = vector.load %arg2[%c8, %c0_85, %c0_86] : memref<9x4x8xbf16, #tpu.memory_space<vmem>>, vector<1x4x8xbf16>
    %90 = vector.shape_cast %89 : vector<1x4x8xbf16> to vector<4x8xbf16>
    %cst_87 = arith.constant dense<0.000000e+00> : vector<64x8xf32>
    %91 = tpu.matmul %88, %90, %cst_87 {dimension_numbers = #tpu.dot_dimension_numbers<[1], [0], [0], [1], [0, 0, 1, 1], [], []>} : vector<64x4xbf16>, vector<4x8xbf16>, vector<64x8xf32> -> vector<64x8xf32>
    %92 = arith.addf %85, %91 : vector<64x8xf32>
    %c0_88 = arith.constant 0 : index
    %c0_89 = arith.constant 0 : index
    %93 = vector.load %arg4[%c0_88, %c0_89] : memref<1x8xf32, #tpu.memory_space<vmem>>, vector<1x8xf32>
    %94 = vector.broadcast %93 : vector<1x8xf32> to vector<64x8xf32>
    %95 = arith.mulf %92, %94 : vector<64x8xf32>
    %c0_90 = arith.constant 0 : index
    %c0_91 = arith.constant 0 : index
    %96 = vector.load %arg5[%c0_90, %c0_91] : memref<1x8xf32, #tpu.memory_space<vmem>>, vector<1x8xf32>
    %97 = vector.broadcast %96 : vector<1x8xf32> to vector<64x8xf32>
    %98 = arith.addf %95, %97 : vector<64x8xf32>
    %cst_92 = arith.constant 0.000000e+00 : f32
    %99 = vector.broadcast %cst_92 : f32 to vector<64x8xf32>
    %100 = arith.maximumf %98, %99 : vector<64x8xf32>
    %c0_93 = arith.constant 0 : index
    %c0_94 = arith.constant 0 : index
    %c0_95 = arith.constant 0 : index
    %101 = vector.load %arg8[%c0_93, %c0_94, %c0_95] : memref<1x1x8xf32, #tpu.memory_space<vmem>>, vector<1x1x8xf32>
    %102 = vector.shape_cast %101 : vector<1x1x8xf32> to vector<1x8xf32>
    %103 = vector.broadcast %102 : vector<1x8xf32> to vector<64x8xf32>
    %104 = arith.addf %100, %103 : vector<64x8xf32>
    %105 = vector.shape_cast %104 : vector<64x8xf32> to vector<8x8x8xf32>
    %c1_96 = arith.constant 1 : index
    %c1_97 = arith.constant 1 : index
    %c0_98 = arith.constant 0 : index
    %106 = vector.load %arg11[%c1_96, %c1_97, %c0_98] : memref<10x10x8xf32, #tpu.memory_space<vmem>>, vector<8x8x8xf32>
    tpu.vector_store %arg11[%c1_96, %c1_97, %c0_98], %105 {strides = array<i32>} : memref<10x10x8xf32, #tpu.memory_space<vmem>>, vector<8x8x8xf32>,
    %c0_99 = arith.constant 0 : index
    %c0_100 = arith.constant 0 : index
    %c0_101 = arith.constant 0 : index
    %107 = vector.load %arg11[%c0_99, %c0_100, %c0_101] : memref<10x10x8xf32, #tpu.memory_space<vmem>>, vector<10x10x8xf32>
    %cst_102 = arith.constant 0.000000e+00 : f32
    %108 = vector.broadcast %cst_102 : f32 to vector<64x8xf32>
    %109 = vector.extract_strided_slice %107 {offsets = [0, 0, 0], sizes = [8, 8, 8], strides = [1, 1, 1]} : vector<10x10x8xf32> to vector<8x8x8xf32>
    %110 = vector.shape_cast %109 : vector<8x8x8xf32> to vector<64x8xf32>
    %111 = arith.truncf %110 : vector<64x8xf32> to vector<64x8xbf16>
    %c0_103 = arith.constant 0 : index
    %c0_104 = arith.constant 0 : index
    %c0_105 = arith.constant 0 : index
    %112 = vector.load %arg3[%c0_103, %c0_104, %c0_105] : memref<9x8x8xbf16, #tpu.memory_space<vmem>>, vector<1x8x8xbf16>
    %113 = vector.shape_cast %112 : vector<1x8x8xbf16> to vector<8x8xbf16>
    %cst_106 = arith.constant dense<0.000000e+00> : vector<64x8xf32>
    %114 = tpu.matmul %111, %113, %cst_106 {dimension_numbers = #tpu.dot_dimension_numbers<[1], [0], [0], [1], [0, 0, 1, 1], [], []>} : vector<64x8xbf16>, vector<8x8xbf16>, vector<64x8xf32> -> vector<64x8xf32>
    %115 = arith.addf %108, %114 : vector<64x8xf32>
    %116 = vector.extract_strided_slice %107 {offsets = [0, 1, 0], sizes = [8, 8, 8], strides = [1, 1, 1]} : vector<10x10x8xf32> to vector<8x8x8xf32>
    %117 = vector.shape_cast %116 : vector<8x8x8xf32> to vector<64x8xf32>
    %118 = arith.truncf %117 : vector<64x8xf32> to vector<64x8xbf16>
    %c1_107 = arith.constant 1 : index
    %c0_108 = arith.constant 0 : index
    %c0_109 = arith.constant 0 : index
    %119 = vector.load %arg3[%c1_107, %c0_108, %c0_109] : memref<9x8x8xbf16, #tpu.memory_space<vmem>>, vector<1x8x8xbf16>
    %120 = vector.shape_cast %119 : vector<1x8x8xbf16> to vector<8x8xbf16>
    %cst_110 = arith.constant dense<0.000000e+00> : vector<64x8xf32>
    %121 = tpu.matmul %118, %120, %cst_110 {dimension_numbers = #tpu.dot_dimension_numbers<[1], [0], [0], [1], [0, 0, 1, 1], [], []>} : vector<64x8xbf16>, vector<8x8xbf16>, vector<64x8xf32> -> vector<64x8xf32>
    %122 = arith.addf %115, %121 : vector<64x8xf32>
    %123 = vector.extract_strided_slice %107 {offsets = [0, 2, 0], sizes = [8, 8, 8], strides = [1, 1, 1]} : vector<10x10x8xf32> to vector<8x8x8xf32>
    %124 = vector.shape_cast %123 : vector<8x8x8xf32> to vector<64x8xf32>
    %125 = arith.truncf %124 : vector<64x8xf32> to vector<64x8xbf16>
    %c2_111 = arith.constant 2 : index
    %c0_112 = arith.constant 0 : index
    %c0_113 = arith.constant 0 : index
    %126 = vector.load %arg3[%c2_111, %c0_112, %c0_113] : memref<9x8x8xbf16, #tpu.memory_space<vmem>>, vector<1x8x8xbf16>
    %127 = vector.shape_cast %126 : vector<1x8x8xbf16> to vector<8x8xbf16>
    %cst_114 = arith.constant dense<0.000000e+00> : vector<64x8xf32>
    %128 = tpu.matmul %125, %127, %cst_114 {dimension_numbers = #tpu.dot_dimension_numbers<[1], [0], [0], [1], [0, 0, 1, 1], [], []>} : vector<64x8xbf16>, vector<8x8xbf16>, vector<64x8xf32> -> vector<64x8xf32>
    %129 = arith.addf %122, %128 : vector<64x8xf32>
    %130 = vector.extract_strided_slice %107 {offsets = [1, 0, 0], sizes = [8, 8, 8], strides = [1, 1, 1]} : vector<10x10x8xf32> to vector<8x8x8xf32>
    %131 = vector.shape_cast %130 : vector<8x8x8xf32> to vector<64x8xf32>
    %132 = arith.truncf %131 : vector<64x8xf32> to vector<64x8xbf16>
    %c3_115 = arith.constant 3 : index
    %c0_116 = arith.constant 0 : index
    %c0_117 = arith.constant 0 : index
    %133 = vector.load %arg3[%c3_115, %c0_116, %c0_117] : memref<9x8x8xbf16, #tpu.memory_space<vmem>>, vector<1x8x8xbf16>
    %134 = vector.shape_cast %133 : vector<1x8x8xbf16> to vector<8x8xbf16>
    %cst_118 = arith.constant dense<0.000000e+00> : vector<64x8xf32>
    %135 = tpu.matmul %132, %134, %cst_118 {dimension_numbers = #tpu.dot_dimension_numbers<[1], [0], [0], [1], [0, 0, 1, 1], [], []>} : vector<64x8xbf16>, vector<8x8xbf16>, vector<64x8xf32> -> vector<64x8xf32>
    %136 = arith.addf %129, %135 : vector<64x8xf32>
    %137 = vector.extract_strided_slice %107 {offsets = [1, 1, 0], sizes = [8, 8, 8], strides = [1, 1, 1]} : vector<10x10x8xf32> to vector<8x8x8xf32>
    %138 = vector.shape_cast %137 : vector<8x8x8xf32> to vector<64x8xf32>
    %139 = arith.truncf %138 : vector<64x8xf32> to vector<64x8xbf16>
    %c4_119 = arith.constant 4 : index
    %c0_120 = arith.constant 0 : index
    %c0_121 = arith.constant 0 : index
    %140 = vector.load %arg3[%c4_119, %c0_120, %c0_121] : memref<9x8x8xbf16, #tpu.memory_space<vmem>>, vector<1x8x8xbf16>
    %141 = vector.shape_cast %140 : vector<1x8x8xbf16> to vector<8x8xbf16>
    %cst_122 = arith.constant dense<0.000000e+00> : vector<64x8xf32>
    %142 = tpu.matmul %139, %141, %cst_122 {dimension_numbers = #tpu.dot_dimension_numbers<[1], [0], [0], [1], [0, 0, 1, 1], [], []>} : vector<64x8xbf16>, vector<8x8xbf16>, vector<64x8xf32> -> vector<64x8xf32>
    %143 = arith.addf %136, %142 : vector<64x8xf32>
    %144 = vector.extract_strided_slice %107 {offsets = [1, 2, 0], sizes = [8, 8, 8], strides = [1, 1, 1]} : vector<10x10x8xf32> to vector<8x8x8xf32>
    %145 = vector.shape_cast %144 : vector<8x8x8xf32> to vector<64x8xf32>
    %146 = arith.truncf %145 : vector<64x8xf32> to vector<64x8xbf16>
    %c5_123 = arith.constant 5 : index
    %c0_124 = arith.constant 0 : index
    %c0_125 = arith.constant 0 : index
    %147 = vector.load %arg3[%c5_123, %c0_124, %c0_125] : memref<9x8x8xbf16, #tpu.memory_space<vmem>>, vector<1x8x8xbf16>
    %148 = vector.shape_cast %147 : vector<1x8x8xbf16> to vector<8x8xbf16>
    %cst_126 = arith.constant dense<0.000000e+00> : vector<64x8xf32>
    %149 = tpu.matmul %146, %148, %cst_126 {dimension_numbers = #tpu.dot_dimension_numbers<[1], [0], [0], [1], [0, 0, 1, 1], [], []>} : vector<64x8xbf16>, vector<8x8xbf16>, vector<64x8xf32> -> vector<64x8xf32>
    %150 = arith.addf %143, %149 : vector<64x8xf32>
    %151 = vector.extract_strided_slice %107 {offsets = [2, 0, 0], sizes = [8, 8, 8], strides = [1, 1, 1]} : vector<10x10x8xf32> to vector<8x8x8xf32>
    %152 = vector.shape_cast %151 : vector<8x8x8xf32> to vector<64x8xf32>
    %153 = arith.truncf %152 : vector<64x8xf32> to vector<64x8xbf16>
    %c6_127 = arith.constant 6 : index
    %c0_128 = arith.constant 0 : index
    %c0_129 = arith.constant 0 : index
    %154 = vector.load %arg3[%c6_127, %c0_128, %c0_129] : memref<9x8x8xbf16, #tpu.memory_space<vmem>>, vector<1x8x8xbf16>
    %155 = vector.shape_cast %154 : vector<1x8x8xbf16> to vector<8x8xbf16>
    %cst_130 = arith.constant dense<0.000000e+00> : vector<64x8xf32>
    %156 = tpu.matmul %153, %155, %cst_130 {dimension_numbers = #tpu.dot_dimension_numbers<[1], [0], [0], [1], [0, 0, 1, 1], [], []>} : vector<64x8xbf16>, vector<8x8xbf16>, vector<64x8xf32> -> vector<64x8xf32>
    %157 = arith.addf %150, %156 : vector<64x8xf32>
    %158 = vector.extract_strided_slice %107 {offsets = [2, 1, 0], sizes = [8, 8, 8], strides = [1, 1, 1]} : vector<10x10x8xf32> to vector<8x8x8xf32>
    %159 = vector.shape_cast %158 : vector<8x8x8xf32> to vector<64x8xf32>
    %160 = arith.truncf %159 : vector<64x8xf32> to vector<64x8xbf16>
    %c7_131 = arith.constant 7 : index
    %c0_132 = arith.constant 0 : index
    %c0_133 = arith.constant 0 : index
    %161 = vector.load %arg3[%c7_131, %c0_132, %c0_133] : memref<9x8x8xbf16, #tpu.memory_space<vmem>>, vector<1x8x8xbf16>
    %162 = vector.shape_cast %161 : vector<1x8x8xbf16> to vector<8x8xbf16>
    %cst_134 = arith.constant dense<0.000000e+00> : vector<64x8xf32>
    %163 = tpu.matmul %160, %162, %cst_134 {dimension_numbers = #tpu.dot_dimension_numbers<[1], [0], [0], [1], [0, 0, 1, 1], [], []>} : vector<64x8xbf16>, vector<8x8xbf16>, vector<64x8xf32> -> vector<64x8xf32>
    %164 = arith.addf %157, %163 : vector<64x8xf32>
    %165 = vector.extract_strided_slice %107 {offsets = [2, 2, 0], sizes = [8, 8, 8], strides = [1, 1, 1]} : vector<10x10x8xf32> to vector<8x8x8xf32>
    %166 = vector.shape_cast %165 : vector<8x8x8xf32> to vector<64x8xf32>
    %167 = arith.truncf %166 : vector<64x8xf32> to vector<64x8xbf16>
    %c8_135 = arith.constant 8 : index
    %c0_136 = arith.constant 0 : index
    %c0_137 = arith.constant 0 : index
    %168 = vector.load %arg3[%c8_135, %c0_136, %c0_137] : memref<9x8x8xbf16, #tpu.memory_space<vmem>>, vector<1x8x8xbf16>
    %169 = vector.shape_cast %168 : vector<1x8x8xbf16> to vector<8x8xbf16>
    %cst_138 = arith.constant dense<0.000000e+00> : vector<64x8xf32>
    %170 = tpu.matmul %167, %169, %cst_138 {dimension_numbers = #tpu.dot_dimension_numbers<[1], [0], [0], [1], [0, 0, 1, 1], [], []>} : vector<64x8xbf16>, vector<8x8xbf16>, vector<64x8xf32> -> vector<64x8xf32>
    %171 = arith.addf %164, %170 : vector<64x8xf32>
    %c0_139 = arith.constant 0 : index
    %c0_140 = arith.constant 0 : index
    %172 = vector.load %arg6[%c0_139, %c0_140] : memref<1x8xf32, #tpu.memory_space<vmem>>, vector<1x8xf32>
    %173 = vector.broadcast %172 : vector<1x8xf32> to vector<64x8xf32>
    %174 = arith.mulf %171, %173 : vector<64x8xf32>
    %c0_141 = arith.constant 0 : index
    %c0_142 = arith.constant 0 : index
    %175 = vector.load %arg7[%c0_141, %c0_142] : memref<1x8xf32, #tpu.memory_space<vmem>>, vector<1x8xf32>
    %176 = vector.broadcast %175 : vector<1x8xf32> to vector<64x8xf32>
    %177 = arith.addf %174, %176 : vector<64x8xf32>
    %cst_143 = arith.constant 0.000000e+00 : f32
    %178 = vector.broadcast %cst_143 : f32 to vector<64x8xf32>
    %179 = arith.maximumf %177, %178 : vector<64x8xf32>
    %180 = vector.shape_cast %179 : vector<64x8xf32> to vector<1x64x8xf32>
    %c0_144 = arith.constant 0 : index
    %c0_145 = arith.constant 0 : index
    %c0_146 = arith.constant 0 : index
    %181 = vector.load %arg9[%c0_144, %c0_145, %c0_146] : memref<1x64x8xf32, #tpu.memory_space<vmem>>, vector<1x64x8xf32>
    tpu.vector_store %arg9[%c0_144, %c0_145, %c0_146], %180 {strides = array<i32>} : memref<1x64x8xf32, #tpu.memory_space<vmem>>, vector<1x64x8xf32>,
    return
  }
  func.func @transform_0(%arg0: i32) -> (i32, i32, i32, i32, i32, i32) {
    %c0_i32 = arith.constant 0 : i32
    %c0_i32_0 = arith.constant 0 : i32
    %c0_i32_1 = arith.constant 0 : i32
    %c0_i32_2 = arith.constant 0 : i32
    %c0_i32_3 = arith.constant 0 : i32
    %c0_i32_4 = arith.constant 0 : i32
    return %arg0, %c0_i32, %c0_i32_0, %c0_i32_1, %c0_i32_2, %c0_i32_3 : i32, i32, i32, i32, i32, i32
  }
  func.func @transform_1(%arg0: i32) -> (i32, i32, i32) {
    %c0_i32 = arith.constant 0 : i32
    %c0_i32_0 = arith.constant 0 : i32
    %c0_i32_1 = arith.constant 0 : i32
    %c0_i32_2 = arith.constant 0 : i32
    return %c0_i32, %c0_i32_0, %c0_i32_1 : i32, i32, i32
  }
  func.func @transform_2(%arg0: i32) -> (i32, i32, i32) {
    %c0_i32 = arith.constant 0 : i32
    %c0_i32_0 = arith.constant 0 : i32
    %c0_i32_1 = arith.constant 0 : i32
    %c0_i32_2 = arith.constant 0 : i32
    return %c0_i32, %c0_i32_0, %c0_i32_1 : i32, i32, i32
  }
  func.func @transform_3(%arg0: i32) -> (i32, i32) {
    %c0_i32 = arith.constant 0 : i32
    %c0_i32_0 = arith.constant 0 : i32
    %c0_i32_1 = arith.constant 0 : i32
    return %c0_i32, %c0_i32_0 : i32, i32
  }
  func.func @transform_4(%arg0: i32) -> (i32, i32) {
    %c0_i32 = arith.constant 0 : i32
    %c0_i32_0 = arith.constant 0 : i32
    %c0_i32_1 = arith.constant 0 : i32
    return %c0_i32, %c0_i32_0 : i32, i32
  }
  func.func @transform_5(%arg0: i32) -> (i32, i32) {
    %c0_i32 = arith.constant 0 : i32
    %c0_i32_0 = arith.constant 0 : i32
    %c0_i32_1 = arith.constant 0 : i32
    return %c0_i32, %c0_i32_0 : i32, i32
  }
  func.func @transform_6(%arg0: i32) -> (i32, i32) {
    %c0_i32 = arith.constant 0 : i32
    %c0_i32_0 = arith.constant 0 : i32
    %c0_i32_1 = arith.constant 0 : i32
    return %c0_i32, %c0_i32_0 : i32, i32
  }
  func.func @transform_7(%arg0: i32) -> (i32, i32, i32) {
    %c0_i32 = arith.constant 0 : i32
    %c0_i32_0 = arith.constant 0 : i32
    %c0_i32_1 = arith.constant 0 : i32
    return %arg0, %c0_i32, %c0_i32_0 : i32, i32, i32
  }
  func.func @transform_8(%arg0: i32) -> (i32, i32, i32) {
    %c0_i32 = arith.constant 0 : i32
    %c0_i32_0 = arith.constant 0 : i32
    %c0_i32_1 = arith.constant 0 : i32
    return %arg0, %c0_i32, %c0_i32_0 : i32, i32, i32
  }
}

</mosaic_0001>

<bundles_post_ra>
// kernel: down_forward.1
= control target key start
LH: loop header
LB: loop body
LE: loop exit
PB: predicated region body
PF: predicated region fallthrough
CT: control target
= control target key end

     0   :  { %s1979_s27 = smov 0   ;;  %s2707_s0 = inlined_call_operand.vmem [shape: f32[2,2,2,8,8,4], index: 0, kind: input, shape index: {}]   ;;  %s2708_s1 = inlined_call_operand.vmem [shape: bf16[9,4,8], index: 1, kind: input, shape index: {}]   ;;  %s2709_s2 = inlined_call_operand.vmem [shape: bf16[9,8,8], index: 2, kind: input, shape index: {}]   ;;  %s2710_s3 = inlined_call_operand.vmem [shape: f32[1,8], index: 3, kind: input, shape index: {}]   ;;  %s2711_s4 = inlined_call_operand.vmem [shape: f32[1,8], index: 4, kind: input, shape index: {}]   ;;  %s2712_s5 = inlined_call_operand.vmem [shape: f32[1,8], index: 5, kind: input, shape index: {}]   ;;  %s2713_s6 = inlined_call_operand.vmem [shape: f32[1,8], index: 6, kind: input, shape index: {}]   ;;  %s2714_s7 = inlined_call_operand.vmem [shape: f32[2,1,8], index: 7, kind: input, shape index: {}]   ;;  %s2715_s8 = inlined_call_operand.vmem [shape: f32[2,64,8], index: 8, kind: output, shape index: {}]  }
   0x1 LB: > { %s1784_s28 = sadd.s32 4294967295, %s1931_s27   ;;  %p1788_p0 = scmp.ge.s32.totalorder %s1931_s27, 1  ;;  %s1931_s27 = sphi %s1979_s27, %s18_s27  }
   0x2   : > { %p270_p1 = scmp.lt.s32.totalorder %s1931_s27, 3 }
   0x4   : > { %p271_p2 = pnand %p1788_p0, %p270_p1 }
   0x5   : > { %p307_p3 = scmp.lt.s32.totalorder (!%p271_p2), %s1784_s28, 1 }
   0x6   : > { %274 = sbr.rel (%p271_p2) target bundleno = 617 (0x269), region = 52 }
   0xb   : > { %v469_v0 = vld [vmem:[%s2708_s1] sm:$0x3]  ;;  %vm537_vm0 = vcmask 1041408   ;;  %v1817_v1 = vld [vmem:[%s2708_s1 + $0x2] sm:$0x3]  ;;  %vm380_vm1 = vcmask 31744  }
   0xc   : > { %v583_v2 = vsel %vm537_vm0, %v469_v0, 0  ;;  %v539_v3 = vsel %vm537_vm0, %v1817_v1, 0  ;;  %v1826_v4 = vld [vmem:[%s2708_s1 + $0x4] sm:$0x3]  ;;  %s2717_s28 = smov (!%p307_p3, %s1784_s28), 1  ;;  %vm387_vm2 = vcmask 24576  }
   0xd   : > { %1910 = vmatpush.bf16.msra.mxu3 %v583_v2  ;;  %1909 = vmatpush.bf16.msra.mxu2 %v539_v3  ;;  %v1933_v5 = vmov 0.0   ;;  %v666_v6 = vsel %vm537_vm0, %v1826_v4, 0  ;;  %s1907_s13 = sshll.u32 %s2717_s28, 8  ;;  %v1831_v19 = vld [vmem:[%s2708_s1 + $0x6] sm:$0x3]  ;;  %vm382_vm3 = vcmask 25600   ;;  %s314_s11 = scalar_lea.vmem %s2714_s7, %s2717_s28 }
   0xe   : > { %381 = vst.msk [vmem:[#allocation2] sm:$0xff] %vm380_vm1, %v1933_v5  ;;  %548 = vmatpush.bf16.msra.mxu0 %v539_v3  ;;  %592 = vmatpush.bf16.msra.mxu1 %v583_v2  ;;  %s2011_s16 = scalar_lea.vmem %s2707_s0, %s1907_s13  ;;  %v1836_v20 = vld [vmem:[%s2708_s1 + $0x8] sm:$0x3]  ;;  %v724_v23 = vsel %vm537_vm0, %v1831_v19, 0  ;;  %vm486_vm4 = vcmask 1046528   ;;  %vm614_vm5 = vcmask 1045504  }
   0xf   : > { %392 = vst.msk [vmem:[#allocation2 + $0x40] sm:$0x1] %vm387_vm2, %v1933_v5  ;;  %v324_v7 = vld [vmem:[%s2011_s16 + $0x18] sm:$0xff]  ;;  %v325_v8 = vld [vmem:[%s2011_s16 + $0x20] sm:$0xff]  ;;  %v788_v24 = vsel %vm537_vm0, %v1836_v20, 0  ;;  %v326_v29 = vld [vmem:[%s2011_s16 + $0x28] sm:$0xff] }
  0x10   : > { %393 = vst.msk [vmem:[#allocation2 + $0x50] sm:$0x1] %vm387_vm2, %v1933_v5  ;;  %v1796_v9 = vld [vmem:[%s2011_s16 + $0x58] sm:$0xff]  ;;  %v1797_v10 = vld [vmem:[%s2011_s16 + $0x60] sm:$0xff]  ;;  %v1798_v30 = vld [vmem:[%s2011_s16 + $0x68] sm:$0xff]  ;;  %vm1181_vm6 = vcmask 1043456  }
  0x11   : > { %675 = vmatpush.bf16.msrb.mxu2 %v666_v6  ;;  %385 = vst.msk [vmem:[#allocation2 + $0x90] sm:$0xff] %vm380_vm1, %v1933_v5  ;;  %v341_v11 = vmax.f32 %v324_v7, %v1796_v9  ;;  %v1804_v12 = vld [vmem:[%s2011_s16 + $0x98] sm:$0xff]  ;;  %v1805_v13 = vld [vmem:[%s2011_s16 + $0xa0] sm:$0xff]  ;;  %v342_v14 = vmax.f32 %v325_v8, %v1797_v10  ;;  %733 = vmatpush.bf16.msrb.mxu3 %v724_v23  ;;  %v327_v31 = vld [vmem:[%s2011_s16 + $0x30] sm:$0xff]  ;;  %vm417_vm7 = vcmask 64512   ;;  %vm419_vm8 = vcmask 58368  }
  0x12   : > { %389 = vst.msk [vmem:[#allocation2 + $0x10] sm:$0x1] %vm387_vm2, %v1933_v5  ;;  %v1812_v15 = vld [vmem:[%s2011_s16 + $0xd8] sm:$0xff]  ;;  %v1813_v16 = vld [vmem:[%s2011_s16 + $0xe0] sm:$0xff]  ;;  %797 = vmatpush.bf16.msrb.mxu0 %v788_v24  ;;  %v1799_v32 = vld [vmem:[%s2011_s16 + $0x70] sm:$0xff]  ;;  %v343_v47 = vmax.f32 %v326_v29, %v1798_v30  ;;  %vm424_vm9 = vcmask 57344  }
  0x13   : > { %390 = vst.msk [vmem:[#allocation2 + $0x20] sm:$0x1] %vm387_vm2, %v1933_v5  ;;  %v367_v17 = vmax.f32 %v1804_v12, %v1812_v15  ;;  %v368_v18 = vmax.f32 %v1805_v13, %v1813_v16  ;;  %v321_v25 = vld [vmem:[%s2011_s16] sm:$0xff]  ;;  %v1806_v33 = vld [vmem:[%s2011_s16 + $0xa8] sm:$0xff]  ;;  %v1807_v34 = vld [vmem:[%s2011_s16 + $0xb0] sm:$0xff]  ;;  %v344_v53 = vmax.f32 %v327_v31, %v1799_v32  ;;  %s1908_s20 = sshll.u32 %s2717_s28, 6 }
  0x14   : > { %391 = vst.msk [vmem:[#allocation2 + $0x30] sm:$0x1] %vm387_vm2, %v1933_v5  ;;  %v1793_v26 = vld [vmem:[%s2011_s16 + $0x40] sm:$0xff]  ;;  %v1814_v37 = vld [vmem:[%s2011_s16 + $0xe8] sm:$0xff]  ;;  %v1815_v38 = vld [vmem:[%s2011_s16 + $0xf0] sm:$0xff]  ;;  %s2652_s23 = scalar_lea.vmem %s2715_s8, %s1908_s20 }
  0x15   : > { %394 = vst.msk [vmem:[#allocation2 + $0x60] sm:$0x1] %vm387_vm2, %v1933_v5  ;;  %v375_v21 = vmax.f32 %v341_v11, %v367_v17  ;;  %v376_v22 = vmax.f32 %v342_v14, %v368_v18  ;;  %v1801_v27 = vld [vmem:[%s2011_s16 + $0x80] sm:$0xff]  ;;  %v338_v35 = vmax.f32 %v321_v25, %v1793_v26  ;;  %v322_v39 = vld [vmem:[%s2011_s16 + $0x8] sm:$0xff]  ;;  %v323_v40 = vld [vmem:[%s2011_s16 + $0x10] sm:$0xff]  ;;  %v369_v48 = vmax.f32 %v1806_v33, %v1814_v37 }
  0x16   : > { %395 = vst.msk [vmem:[#allocation2 + $0x70] sm:$0x1] %vm387_vm2, %v1933_v5  ;;  %v1809_v28 = vld [vmem:[%s2011_s16 + $0xc0] sm:$0xff]  ;;  %v1794_v41 = vld [vmem:[%s2011_s16 + $0x48] sm:$0xff]  ;;  %v1795_v42 = vld [vmem:[%s2011_s16 + $0x50] sm:$0xff]  ;;  %v370_v54 = vmax.f32 %v1807_v34, %v1815_v38 }
  0x17   : > { %396 = vst.msk [vmem:[#allocation2 + $0x80] sm:$0x1] %vm387_vm2, %v1933_v5  ;;  %v364_v36 = vmax.f32 %v1801_v27, %v1809_v28  ;;  %v1802_v44 = vld [vmem:[%s2011_s16 + $0x88] sm:$0xff]  ;;  %v1803_v49 = vld [vmem:[%s2011_s16 + $0x90] sm:$0xff]  ;;  %v339_v56 = vmax.f32 %v322_v39, %v1794_v41  ;;  %v340_v60 = vmax.f32 %v323_v40, %v1795_v42  ;;  %v377_v0 = vmax.f32 %v343_v47, %v369_v48 }
  0x18   : > { %399 = vst.msk [vmem:[#allocation2 + $0x19] sm:$0x1] %vm387_vm2, %v1933_v5  ;;  %v1810_v45 = vld [vmem:[%s2011_s16 + $0xc8] sm:$0xff]  ;;  %v1811_v50 = vld [vmem:[%s2011_s16 + $0xd0] sm:$0xff]  ;;  %v378_v2 = vmax.f32 %v344_v53, %v370_v54 }
  0x19   : > { %412 = vst.msk [vmem:[#allocation2 + $0x41] sm:$0xff] %vm380_vm1, %v375_v21  ;;  %v372_v52 = vmax.f32 %v338_v35, %v364_v36  ;;  %v365_v57 = vmax.f32 %v1802_v44, %v1810_v45  ;;  %v366_v61 = vmax.f32 %v1803_v49, %v1811_v50  ;;  %v1846_v11 = vld [vmem:[%s2708_s1 + $0xc] sm:$0x3]  ;;  %v1851_v36 = vld [vmem:[%s2708_s1 + $0xe] sm:$0x3] }
  0x1a   : > { %413 = vst.msk [vmem:[#allocation2 + $0x51] sm:$0xff] %vm380_vm1, %v376_v22  ;;  %v896_v13 = vsel %vm537_vm0, %v1846_v11, 0  ;;  %v1841_v37 = vld [vmem:[%s2708_s1 + $0xa] sm:$0x3]  ;;  %v948_v40 = vsel %vm537_vm0, %v1851_v36, 0 }
  0x1b   : > { %400 = vst.msk [vmem:[#allocation2 + $0x29] sm:$0x1] %vm387_vm2, %v1933_v5  ;;  %v373_v4 = vmax.f32 %v339_v56, %v365_v57  ;;  %v374_v7 = vmax.f32 %v340_v60, %v366_v61  ;;  %v1856_v41 = vld [vmem:[%s2708_s1 + $0x10] sm:$0x3]  ;;  %v850_v42 = vsel %vm537_vm0, %v1841_v37, 0 }
  0x1c   : > { %401 = vst.msk [vmem:[#allocation2 + $0x39] sm:$0x1] %vm387_vm2, %v1933_v5  ;;  %v998_v44 = vsel %vm537_vm0, %v1856_v41, 0  ;;  %859 = vmatpush.bf16.msrb.mxu1 %v850_v42 }
  0x1d   : > { %402 = vst.msk [vmem:[#allocation2 + $0x49] sm:$0x1] %vm387_vm2, %v1933_v5 }
  0x1e   : > { %403 = vst.msk [vmem:[#allocation2 + $0x59] sm:$0x1] %vm387_vm2, %v1933_v5 }
  0x1f   : > { %404 = vst.msk [vmem:[#allocation2 + $0x69] sm:$0x1] %vm387_vm2, %v1933_v5 }
  0x20   : > { %v2073_v43 = vld [vmem:[#allocation2 + $0x40] sm:$0xff]  ;;  %405 = vst.msk [vmem:[#allocation2 + $0x79] sm:$0x1] %vm387_vm2, %v1933_v5 }
  0x21   : > { %v2079_v46 = vld [vmem:[#allocation2 + $0x50] sm:$0xff]  ;;  %406 = vst.msk [vmem:[#allocation2 + $0x89] sm:$0x1] %vm387_vm2, %v1933_v5  ;;  %v499_v55 = vrot.slane %v2073_v43, 1 }
  0x22   : > { %v2087_v51 = vpack.c.bf16 %v2079_v46, %v2073_v43  ;;  %388 = vst.msk [vmem:[#allocation2] sm:$0x1] %vm387_vm2, %v1933_v5  ;;  %v502_v59 = vrot.slane %v2079_v46, 1 }
  0x23   : > { %397 = vst.msk [vmem:[#allocation2 + $0x90] sm:$0x1] %vm387_vm2, %v1933_v5 }
  0x24   : > { %1824 = vmatmul.msk.bf16.vlgmr.msra.gmra.mxu3 %vm380_vm1, %v2087_v51  ;;  %v2096_v58 = vld [vmem:[#allocation2 + $0x48] sm:$0x3]  ;;  %383 = vst.msk [vmem:[#allocation2 + $0x8] sm:$0x3] %vm382_vm3, %v1933_v5 }
  0x25   : > { %v2101_v62 = vld [vmem:[#allocation2 + $0x58] sm:$0x3]  ;;  %v500_v63 = vrot.slane %v2096_v58, 1  ;;  %398 = vst.msk [vmem:[#allocation2 + $0x9] sm:$0x1] %vm387_vm2, %v1933_v5  ;;  %957 = vmatpush.bf16.msra.mxu3 %v948_v40 }
  0x26   : > { %v503_v1 = vrot.slane %v2101_v62, 1  ;;  %409 = vst.msk [vmem:[#allocation2 + $0x11] sm:$0xff] %vm380_vm1, %v372_v52 }
  0x27   : > { %v2109_v3 = vsel %vm486_vm4, %v499_v55, %v500_v63  ;;  %386 = vst.msk [vmem:[#allocation2 + $0x98] sm:$0x3] %vm382_vm3, %v1933_v5 }
  0x28   : > { %v2114_v6 = vsel %vm486_vm4, %v502_v59, %v503_v1  ;;  %407 = vst.msk [vmem:[#allocation2 + $0x99] sm:$0x1] %vm387_vm2, %v1933_v5  ;;  %v630_v1 = vrot.slane %v2079_v46, 2 }
  0x29   : > { %v2120_v8 = vpack.c.bf16 %v2114_v6, %v2109_v3  ;;  %v2122_v9 = vld [vmem:[#allocation2] sm:$0xff]  ;;  %414 = vst.msk [vmem:[#allocation2 + $0x61] sm:$0xff] %vm380_vm1, %v377_v0 }
  0x2a   : > { %415 = vst.msk [vmem:[#allocation2 + $0x71] sm:$0xff] %vm380_vm1, %v378_v2  ;;  %v487_v10 = vrot.slane %v2122_v9, 1  ;;  %v615_v56 = vrot.slane %v2122_v9, 2  ;;  %v631_v2 = vrot.slane %v2101_v62, 2 }
  0x2b   : > { %1820 = vmatmul.msk.bf16.vlgmr.msra.gmra.mxu2 %vm380_vm1, %v2120_v8  ;;  %410 = vst.msk [vmem:[#allocation2 + $0x21] sm:$0xff] %vm380_vm1, %v373_v4 }
  0x2c   : > { %v446_v12 = vld [vmem:[#allocation2 + $0x8] sm:$0x3]  ;;  %411 = vst.msk [vmem:[#allocation2 + $0x31] sm:$0xff] %vm380_vm1, %v374_v7  ;;  %905 = vmatpush.bf16.msra.mxu2 %v896_v13 }
  0x2d   : > { %v447_v14 = vld [vmem:[#allocation2 + $0x10] sm:$0xff]  ;;  %v448_v15 = vld [vmem:[#allocation2 + $0x18] sm:$0x3]  ;;  %v488_v16 = vrot.slane %v446_v12, 1  ;;  %v616_v57 = vrot.slane %v446_v12, 2  ;;  %418 = vst.msk [vmem:[#allocation3] sm:$0xff] %vm417_vm7, %v1933_v5 }
  0x2e   : > { %v490_v17 = vrot.slane %v447_v14, 1  ;;  %v491_v18 = vrot.slane %v448_v15, 1  ;;  %v465_v19 = vpack.c.bf16 %v447_v14, %v2122_v9  ;;  %v619_v59 = vrot.slane %v448_v15, 2  ;;  %v1800_v15 = vld [vmem:[%s2011_s16 + $0x78] sm:$0xff]  ;;  %422 = vst.msk [vmem:[#allocation3 + $0x90] sm:$0xff] %vm417_vm7, %v1933_v5 }
  0x2f   : > { %v489_v20 = vsel %vm486_vm4, %v487_v10, %v488_v16  ;;  %v618_v61 = vrot.slane %v447_v14, 2  ;;  %v617_v63 = vsel %vm614_vm5, %v615_v56, %v616_v57  ;;  %v632_v9 = vsel %vm614_vm5, %v630_v1, %v631_v2  ;;  %v1808_v16 = vld [vmem:[%s2011_s16 + $0xb8] sm:$0xff]  ;;  %420 = vst.msk [vmem:[#allocation3 + $0x8] sm:$0x3] %vm419_vm8, %v1933_v5 }
  0x30   : > { %v2138_v21 = vsel %vm486_vm4, %v490_v17, %v491_v18  ;;  %1822 = vmatmul.msk.bf16.vlgmr.msra.gmra.mxu1 %vm380_vm1, %v465_v19  ;;  %v2141_v22 = vld [vmem:[#allocation2 + $0x60] sm:$0xff]  ;;  %v2143_v23 = vld [vmem:[#allocation2 + $0x68] sm:$0x3]  ;;  %425 = vst.msk [vmem:[#allocation3] sm:$0x1] %vm424_vm9, %v1933_v5 }
  0x31   : > { %v519_v24 = vpack.c.bf16 %v2138_v21, %v489_v20  ;;  %v2146_v25 = vld [vmem:[#allocation2 + $0x70] sm:$0xff]  ;;  %v2148_v26 = vld [vmem:[#allocation2 + $0x78] sm:$0x3]  ;;  %v505_v27 = vrot.slane %v2141_v22, 1  ;;  %v506_v28 = vrot.slane %v2143_v23, 1  ;;  %v620_v0 = vsel %vm614_vm5, %v618_v61, %v619_v59 }
  0x32   : > { %v2154_v29 = vpack.c.bf16 %v2146_v25, %v2141_v22  ;;  %v508_v30 = vrot.slane %v2146_v25, 1  ;;  %v509_v31 = vrot.slane %v2148_v26, 1  ;;  %v449_v32 = vld [vmem:[#allocation2 + $0x20] sm:$0xff]  ;;  %v450_v35 = vld [vmem:[#allocation2 + $0x28] sm:$0x3]  ;;  %v647_v10 = vpack.c.bf16 %v620_v0, %v617_v63  ;;  %v1816_v20 = vld [vmem:[%s2011_s16 + $0xf8] sm:$0xff] }
  0x33   : > { %1818 = vmatmul.msk.bf16.vlgmr.msra.gmra.mxu0 %vm380_vm1, %v519_v24  ;;  %v2162_v33 = vsel %vm486_vm4, %v505_v27, %v506_v28  ;;  %v451_v38 = vld [vmem:[#allocation2 + $0x30] sm:$0xff]  ;;  %v452_v39 = vld [vmem:[#allocation2 + $0x38] sm:$0x3]  ;;  %v493_v47 = vrot.slane %v449_v32, 1  ;;  %v494_v48 = vrot.slane %v450_v35, 1  ;;  %v705_v60 = vpack.c.bf16 %v449_v32, %v447_v14 }
  0x34   : > { %1825 = vmatmul.msk.bf16.gmra.mxu3 %vm380_vm1, %v2154_v29  ;;  %v2165_v34 = vsel %vm486_vm4, %v508_v30, %v509_v31  ;;  %1007 = vmatpush.bf16.msra.mxu0 %v998_v44  ;;  %v496_v49 = vrot.slane %v451_v38, 1  ;;  %v497_v50 = vrot.slane %v452_v39, 1  ;;  %v2187_v54 = vpack.c.bf16 %v451_v38, %v449_v32  ;;  %v328_v14 = vld [vmem:[%s2011_s16 + $0x38] sm:$0xff]  ;;  %426 = vst.msk [vmem:[#allocation3 + $0x10] sm:$0x1] %vm424_vm9, %v1933_v5 }
  0x35   : > { %v2181_v45 = vpack.c.bf16 %v2165_v34, %v2162_v33  ;;  %v495_v52 = vsel %vm486_vm4, %v493_v47, %v494_v48  ;;  %v622_v4 = vrot.slane %v450_v35, 2  ;;  %v621_v7 = vrot.slane %v449_v32, 2  ;;  %427 = vst.msk [vmem:[#allocation3 + $0x20] sm:$0x1] %vm424_vm9, %v1933_v5 }
  0x36   : > { %v498_v53 = vsel %vm486_vm4, %v496_v49, %v497_v50  ;;  %v769_v13 = vpack.c.bf16 %v495_v52, %v2138_v21  ;;  %v706_v62 = vpack.c.bf16 %v2073_v43, %v451_v38  ;;  %v624_v17 = vrot.slane %v451_v38, 2  ;;  %428 = vst.msk [vmem:[#allocation3 + $0x30] sm:$0x1] %vm424_vm9, %v1933_v5 }
  0x37   : > { %v2189_v55 = vpack.c.bf16 %v498_v53, %v495_v52  ;;  %v623_v11 = vsel %vm614_vm5, %v621_v7, %v622_v4  ;;  %v625_v18 = vrot.slane %v452_v39, 2  ;;  %v345_v19 = vmax.f32 %v328_v14, %v1800_v15  ;;  %429 = vst.msk [vmem:[#allocation3 + $0x40] sm:$0x1] %vm424_vm9, %v1933_v5 }
  0x38   : > { %v831_v12 = vpack.c.bf16 %v623_v11, %v620_v0  ;;  %v371_v24 = vmax.f32 %v1808_v16, %v1816_v20  ;;  %v636_v21 = vrot.slane %v2146_v25, 2  ;;  %v637_v30 = vrot.slane %v2148_v26, 2  ;;  %430 = vst.msk [vmem:[#allocation3 + $0x50] sm:$0x1] %vm424_vm9, %v1933_v5 }
  0x39   : > { %v626_v28 = vsel %vm614_vm5, %v624_v17, %v625_v18  ;;  %v627_v31 = vrot.slane %v2073_v43, 2  ;;  %v628_v32 = vrot.slane %v2096_v58, 2  ;;  %v770_v39 = vpack.c.bf16 %v2109_v3, %v498_v53  ;;  %v464_v53 = vld [vmem:[#allocation2 + $0x98] sm:$0x3]  ;;  %v1861_v18 = vld [vmem:[%s2709_s2 + $0x4] sm:$0xf] }
  0x3a   : > { %v379_v27 = vmax.f32 %v345_v19, %v371_v24  ;;  %v638_v35 = vsel %vm614_vm5, %v636_v21, %v637_v30  ;;  %v648_v36 = vpack.c.bf16 %v626_v28, %v623_v11  ;;  %v707_v26 = vpack.c.bf16 %v2141_v22, %v2079_v46  ;;  %431 = vst.msk [vmem:[#allocation3 + $0x60] sm:$0x1] %vm424_vm9, %v1933_v5 }
  0x3b   : > { %1821 = vmatmul.msk.bf16.gmra.mxu2 %vm380_vm1, %v2181_v45  ;;  %v629_v37 = vsel %vm614_vm5, %v627_v31, %v628_v32  ;;  %v633_v43 = vrot.slane %v2141_v22, 2  ;;  %v634_v58 = vrot.slane %v2143_v23, 2  ;;  %v771_v44 = vpack.c.bf16 %v2162_v33, %v2114_v6  ;;  %432 = vst.msk [vmem:[#allocation3 + $0x70] sm:$0x1] %vm424_vm9, %v1933_v5 }
  0x3c   : > { %416 = vst.msk [vmem:[#allocation2 + $0x81] sm:$0xff] %vm380_vm1, %v379_v27  ;;  %v832_v38 = vpack.c.bf16 %v629_v37, %v626_v28  ;;  %v649_v40 = vpack.c.bf16 %v632_v9, %v629_v37  ;;  %v938_v56 = vrot.slane %v464_v53, 1  ;;  %v1183_v19 = vsel %vm1181_vm6, %v1861_v18, 0 }
  0x3d   : > { %v635_v41 = vsel %vm614_vm5, %v633_v43, %v634_v58  ;;  %1192 = vmatpush.bf16.msra.mxu1 %v1183_v19  ;;  %433 = vst.msk [vmem:[#allocation3 + $0x80] sm:$0x1] %vm424_vm9, %v1933_v5 }
  0x3e   : > { %v833_v42 = vpack.c.bf16 %v635_v41, %v632_v9  ;;  %v650_v48 = vpack.c.bf16 %v638_v35, %v635_v41  ;;  %434 = vst.msk [vmem:[#allocation3 + $0x90] sm:$0x1] %vm424_vm9, %v1933_v5 }
  0x3f   : > { %436 = vst.msk [vmem:[#allocation3 + $0x19] sm:$0x1] %vm424_vm9, %v1933_v5 }
  0x40   : > { %1823 = vmatmul.msk.bf16.gmra.mxu1 %vm380_vm1, %v2187_v54  ;;  %437 = vst.msk [vmem:[#allocation3 + $0x29] sm:$0x1] %vm424_vm9, %v1933_v5 }
  0x41   : > { %438 = vst.msk [vmem:[#allocation3 + $0x39] sm:$0x1] %vm424_vm9, %v1933_v5 }
  0x42   : > { %439 = vst.msk [vmem:[#allocation3 + $0x49] sm:$0x1] %vm424_vm9, %v1933_v5 }
  0x43   : > { %1819 = vmatmul.msk.bf16.gmra.mxu0 %vm380_vm1, %v2189_v55  ;;  %v461_v3 = vld [vmem:[#allocation2 + $0x80] sm:$0xff]  ;;  %v462_v22 = vld [vmem:[#allocation2 + $0x88] sm:$0x3]  ;;  %440 = vst.msk [vmem:[#allocation3 + $0x59] sm:$0x1] %vm424_vm9, %v1933_v5 }
  0x44   : > { %1832 = vmatmul.msk.bf16.vlgmr.msrb.gmra.mxu3 %vm380_vm1, %v705_v60  ;;  %v708_v46 = vpack.c.bf16 %v461_v3, %v2146_v25  ;;  %v827_v23 = vrot.slane %v461_v3, 2  ;;  %v828_v47 = vrot.slane %v462_v22, 2  ;;  %v765_v49 = vrot.slane %v461_v3, 1  ;;  %441 = vst.msk [vmem:[#allocation3 + $0x69] sm:$0x1] %vm424_vm9, %v1933_v5 }
  0x45   : > { %v766_v50 = vrot.slane %v462_v22, 1  ;;  %442 = vst.msk [vmem:[#allocation3 + $0x79] sm:$0x1] %vm424_vm9, %v1933_v5 }
  0x46   : > { %v829_v52 = vsel %vm614_vm5, %v827_v23, %v828_v47  ;;  %443 = vst.msk [vmem:[#allocation3 + $0x89] sm:$0x1] %vm424_vm9, %v1933_v5 }
  0x47   : > { %v767_v6 = vsel %vm486_vm4, %v765_v49, %v766_v50  ;;  %v834_v33 = vpack.c.bf16 %v829_v52, %v638_v35  ;;  %435 = vst.msk [vmem:[#allocation3 + $0x9] sm:$0x1] %vm424_vm9, %v1933_v5 }
  0x48   : > { %v772_v25 = vpack.c.bf16 %v767_v6, %v2165_v34  ;;  %v463_v34 = vld [vmem:[#allocation2 + $0x90] sm:$0xff]  ;;  %423 = vst.msk [vmem:[#allocation3 + $0x98] sm:$0x3] %vm419_vm8, %v1933_v5 }
  0x49   : > { %v889_v0 = vpack.c.bf16 %v463_v34, %v461_v3  ;;  %v987_v2 = vrot.slane %v463_v34, 2  ;;  %444 = vst.msk [vmem:[#allocation3 + $0x99] sm:$0x1] %vm424_vm9, %v1933_v5  ;;  %v1090_v5 = vld [vmem:[#allocation3] sm:$0xff] }
  0x4b   : > { %1827 = vmatmul.msk.bf16.vlgmr.msrb.gmra.mxu2 %vm380_vm1, %v647_v10 }
  0x50   : > { %1842 = vmatmul.msk.bf16.vlgmr.msrb.gmra.mxu1 %vm380_vm1, %v831_v12 }
  0x53   : > { %1837 = vmatmul.msk.bf16.vlgmr.msrb.gmra.mxu0 %vm380_vm1, %v769_v13 }
  0x54   : > { %1833 = vmatmul.msk.bf16.gmra.mxu3 %vm380_vm1, %v706_v62 }
  0x5b   : > { %1828 = vmatmul.msk.bf16.gmra.mxu2 %vm380_vm1, %v648_v36 }
  0x60   : > { %1843 = vmatmul.msk.bf16.gmra.mxu1 %vm380_vm1, %v832_v38 }
  0x63   : > { %1838 = vmatmul.msk.bf16.gmra.mxu0 %vm380_vm1, %v770_v39 }
  0x64   : > { %1834 = vmatmul.msk.bf16.gmra.mxu3 %vm380_vm1, %v707_v26 }
  0x6b   : > { %1829 = vmatmul.msk.bf16.gmra.mxu2 %vm380_vm1, %v649_v40 }
  0x70   : > { %1844 = vmatmul.msk.bf16.gmra.mxu1 %vm380_vm1, %v833_v42 }
  0x73   : > { %1839 = vmatmul.msk.bf16.gmra.mxu0 %vm380_vm1, %v771_v44 }
  0x74   : > { %1835 = vmatmul.msk.bf16.gmra.mxu3 %vm380_vm1, %v708_v46 }
  0x7b   : > { %1830 = vmatmul.msk.bf16.gmra.mxu2 %vm380_vm1, %v650_v48 }
  0x80   : > { %1845 = vmatmul.msk.bf16.gmra.mxu1 %vm380_vm1, %v834_v33 }
  0x83   : > { %1840 = vmatmul.msk.bf16.gmra.mxu0 %vm380_vm1, %v772_v25  ;;  %v1114_v25 = vld [vmem:[%s2709_s2] sm:$0xf] }
  0x84   : > { %1852 = vmatmul.msk.bf16.vlgmr.msra.gmra.mxu3 %vm380_vm1, %v2189_v55  ;;  %v937_v55 = vrot.slane %v463_v34, 1 }
  0x86   : > { %v939_v57 = vsel %vm486_vm4, %v937_v55, %v938_v56  ;;  %v1870_v55 = vld [vmem:[%s2709_s2 + $0x8] sm:$0xf] }
  0x87   : > { %v941_v61 = vpack.c.bf16 %v939_v57, %v767_v6  ;;  %v1309_v56 = vsel %vm1181_vm6, %v1870_v55, 0 }
  0x88   : > { %1318 = vmatpush.bf16.msrb.mxu3 %v1309_v56 }
  0x8b   : > { %1847 = vmatmul.msk.bf16.vlgmr.msra.gmra.mxu2 %vm380_vm1, %v2187_v54 }
  0x93   : > { %1857 = vmatmul.msk.bf16.vlgmr.msra.gmra.mxu0 %vm380_vm1, %v648_v36 }
  0x94   : > { %1853 = vmatmul.msk.bf16.gmra.mxu3 %vm380_vm1, %v2120_v8 }
  0x9b   : > { %1848 = vmatmul.msk.bf16.gmra.mxu2 %vm380_vm1, %v2087_v51 }
  0xa3   : > { %1858 = vmatmul.msk.bf16.gmra.mxu0 %vm380_vm1, %v649_v40 }
  0xa4   : > { %1854 = vmatmul.msk.bf16.gmra.mxu3 %vm380_vm1, %v2181_v45 }
  0xa7   : > { %v604_v54 = vpop.f32.mrf.mxu3 }
  0xab   : > { %1849 = vmatmul.msk.bf16.gmra.mxu2 %vm380_vm1, %v2154_v29  ;;  %v988_v29 = vrot.slane %v464_v53, 2 }
  0xad   : > { %v989_v4 = vsel %vm614_vm5, %v987_v2, %v988_v29  ;;  %v594_v20 = vpop.f32.mrf.mxu1  ;;  %v1875_v29 = vld [vmem:[%s2709_s2 + $0xc] sm:$0xf] }
  0xae   : > { %v560_v59 = vpop.f32.mrf.mxu2  ;;  %v991_v9 = vpack.c.bf16 %v989_v4, %v829_v52 }
  0xaf   : > { %v2263_v8 = vadd.f32 %v604_v54, %v560_v59  ;;  %v2265_v60 = vpop.f32.mrf.mxu3  ;;  %v1227_v54 = vsel %vm1181_vm6, %v1114_v25, 0 }
  0xb0   : > { %v550_v51 = vpop.f32.mrf.mxu0  ;;  %1236 = vmatpush.bf16.msrb.mxu2 %v1227_v54  ;;  %v1091_v54 = vld [vmem:[#allocation3 + $0x8] sm:$0x3] }
  0xb1   : > { %v595_v46 = vadd.f32 %v594_v20, %v550_v51  ;;  %v1880_v20 = vld [vmem:[%s2709_s2 + $0x10] sm:$0xf] }
  0xb3   : > { %1859 = vmatmul.msk.bf16.gmra.mxu0 %vm380_vm1, %v650_v48 }
  0xb4   : > { %1855 = vmatmul.msk.bf16.gmra.mxu3 %vm380_vm1, %v941_v61 }
  0xb5   : > { %v596_v30 = vpop.f32.mrf.mxu1 }
  0xb6   : > { %v2269_v45 = vpop.f32.mrf.mxu2 }
  0xb7   : > { %v609_v63 = vpop.f32.mrf.mxu3 }
  0xb8   : > { %v552_v1 = vpop.f32.mrf.mxu0 }
  0xb9   : > { %v597_v52 = vadd.f32 %v596_v30, %v552_v1  ;;  %v2413_v30 = vld [vmem:[%s314_s11] ss:$0 sm:$0xff] }
  0xbb   : > { %1850 = vmatmul.msk.bf16.gmra.mxu2 %vm380_vm1, %v889_v0 }
  0xbd   : > { %v599_v38 = vpop.f32.mrf.mxu1 }
  0xbe   : > { %v565_v7 = vpop.f32.mrf.mxu2 }
  0xbf   : > { %v2273_v10 = vadd.f32 %v609_v63, %v565_v7  ;;  %v2275_v11 = vpop.f32.mrf.mxu3 }
  0xc0   : > { %v2277_v12 = vpop.f32.mrf.mxu0 }
  0xc1   : > { %v600_v61 = vadd.f32 %v599_v38, %v2277_v12  ;;  %v2379_v12 = vld [vmem:[%s2710_s3] ss:$0 sm:$0xff] }
  0xc3   : > { %1860 = vmatmul.msk.bf16.gmra.mxu0 %vm380_vm1, %v991_v9 }
  0xc5   : > { %v2314_v58 = vpop.f32.mrf.mxu1 }
  0xc6   : > { %v2280_v13 = vpop.f32.mrf.mxu2 }
  0xc7   : > { %v735_v14 = vpop.f32.mrf.mxu3 }
  0xc8   : > { %v2282_v15 = vpop.f32.mrf.mxu0 }
  0xcd   : > { %v861_v3 = vpop.f32.mrf.mxu1 }
  0xce   : > { %v677_v16 = vpop.f32.mrf.mxu2 }
  0xcf   : > { %v737_v62 = vpop.f32.mrf.mxu3  ;;  %v697_v47 = vadd.f32 %v677_v16, %v595_v46 }
  0xd0   : > { %v799_v17 = vpop.f32.mrf.mxu0 }
  0xd1   : > { %v755_v48 = vadd.f32 %v735_v14, %v697_v47  ;;  %v1367_v14 = vsel %vm1181_vm6, %v1875_v29, 0 }
  0xd2   : > { %1376 = vmatpush.bf16.msrb.mxu0 %v1367_v14 }
  0xd3   : > { %v819_v34 = vadd.f32 %v799_v17, %v755_v48 }
  0xd5   : > { %v863_v49 = vpop.f32.mrf.mxu1  ;;  %v881_v57 = vadd.f32 %v861_v3, %v819_v34 }
  0xd6   : > { %v679_v24 = vpop.f32.mrf.mxu2 }
  0xd7   : > { %v2288_v27 = vpop.f32.mrf.mxu3  ;;  %v698_v53 = vadd.f32 %v679_v24, %v597_v52  ;;  %v602_v24 = vadd.f32 %v2314_v58, %v2282_v15 }
  0xd8   : > { %v2290_v28 = vpop.f32.mrf.mxu0 }
  0xd9   : > { %v756_v59 = vadd.f32 %v737_v62, %v698_v53  ;;  %v2389_v62 = vld [vmem:[%s2711_s4] ss:$0 sm:$0xff] }
  0xdb   : > { %v820_v4 = vadd.f32 %v2290_v28, %v756_v59 }
  0xdd   : > { %v866_v63 = vpop.f32.mrf.mxu1  ;;  %v882_v17 = vadd.f32 %v863_v49, %v820_v4 }
  0xde   : > { %v2292_v21 = vpop.f32.mrf.mxu2 }
  0xdf   : > { %v2294_v31 = vpop.f32.mrf.mxu3  ;;  %v699_v7 = vadd.f32 %v2292_v21, %v600_v61  ;;  %v1431_v21 = vsel %vm1181_vm6, %v1880_v20, 0  ;;  %v1131_v61 = vrot.slane %v1090_v5, 1  ;;  %v607_v20 = vadd.f32 %v2265_v60, %v2269_v45 }
  0xe0   : > { %v2296_v32 = vpop.f32.mrf.mxu0  ;;  %1440 = vmatpush.bf16.msrb.mxu1 %v1431_v21 }
  0xe1   : > { %v757_v18 = vadd.f32 %v2288_v27, %v699_v7 }
  0xe3   : > { %v821_v46 = vadd.f32 %v2296_v32, %v757_v18 }
  0xe5   : > { %v868_v47 = vpop.f32.mrf.mxu1  ;;  %v883_v34 = vadd.f32 %v866_v63, %v821_v46 }
  0xe6   : > { %v2298_v35 = vpop.f32.mrf.mxu2 }
  0xe7   : > { %v2300_v36 = vpop.f32.mrf.mxu3  ;;  %v700_v15 = vadd.f32 %v2298_v35, %v602_v24 }
  0xe8   : > { %v2302_v37 = vpop.f32.mrf.mxu0 }
  0xe9   : > { %v758_v25 = vadd.f32 %v2294_v31, %v700_v15  ;;  %v1132_v31 = vrot.slane %v1091_v54, 1 }
  0xeb   : > { %v822_v32 = vadd.f32 %v2302_v37, %v758_v25 }
  0xed   : > { %v871_v29 = vpop.f32.mrf.mxu1 }
  0xee   : > { %v2304_v39 = vpop.f32.mrf.mxu2 }
  0xef   : > { %v2306_v26 = vpop.f32.mrf.mxu3 }
  0xf0   : > { %v2308_v43 = vpop.f32.mrf.mxu0 }
  0xf6   : > { %v2316_v40 = vpop.f32.mrf.mxu2 }
  0xf7   : > { %v2318_v41 = vpop.f32.mrf.mxu3  ;;  %v702_v15 = vadd.f32 %v2316_v40, %v607_v20 }
  0xf8   : > { %v2320_v42 = vpop.f32.mrf.mxu0 }
  0xf9   : > { %v760_v40 = vadd.f32 %v2306_v26, %v702_v15 }
  0xfe   : > { %v2322_v44 = vpop.f32.mrf.mxu2 }
  0xff   : > { %v2324_v22 = vpop.f32.mrf.mxu3 }
 0x100   : > { %v2326_v23 = vpop.f32.mrf.mxu0 }
 0x106   : > { %v2336_v50 = vpop.f32.mrf.mxu2 }
 0x107   : > { %v959_v6 = vpop.f32.mrf.mxu3 }
 0x108   : > { %v2342_v33 = vpop.f32.mrf.mxu0 }
 0x10e   : > { %v907_v51 = vpop.f32.mrf.mxu2 }
 0x10f   : > { %v927_v0 = vadd.f32 %v907_v51, %v881_v57  ;;  %v961_v1 = vpop.f32.mrf.mxu3  ;;  %v701_v57 = vadd.f32 %v2304_v39, %v2263_v8 }
 0x110   : > { %v1009_v2 = vpop.f32.mrf.mxu0 }
 0x111   : > { %v979_v9 = vadd.f32 %v959_v6, %v927_v0  ;;  %v759_v14 = vadd.f32 %v2300_v36, %v701_v57  ;;  %v703_v57 = vadd.f32 %v2322_v44, %v2273_v10 }
 0x113   : > { %v1029_v16 = vadd.f32 %v1009_v2, %v979_v9  ;;  %v1259_v2 = vrot.slane %v1091_v54, 2  ;;  %v884_v9 = vadd.f32 %v868_v47, %v822_v32  ;;  %v823_v45 = vadd.f32 %v2308_v43, %v759_v14 }
 0x114   : > { %v824_v32 = vadd.f32 %v2320_v42, %v760_v40 }
 0x115   : > { %v1041_v19 = vmul.f32 %v2379_v12, %v1029_v16 }
 0x116   : > { %v909_v28 = vpop.f32.mrf.mxu2 }
 0x117   : > { %v1053_v27 = vadd.f32 %v2389_v62, %v1041_v19  ;;  %v928_v38 = vadd.f32 %v909_v28, %v882_v17  ;;  %v964_v3 = vpop.f32.mrf.mxu3  ;;  %v1133_v17 = vsel %vm486_vm4, %v1131_v61, %v1132_v31 }
 0x118   : > { %v1011_v58 = vpop.f32.mrf.mxu0 }
 0x119   : > { %v1061_v48 = vmax.f32 %v1053_v27, 0.0  ;;  %v980_v49 = vadd.f32 %v961_v1, %v928_v38  ;;  %v1258_v1 = vrot.slane %v1090_v5, 2 }
 0x11b   : > { %v1073_v52 = vadd.f32 %v2413_v30, %v1061_v48  ;;  %v1030_v6 = vadd.f32 %v1011_v58, %v980_v49  ;;  %v1260_v28 = vsel %vm614_vm5, %v1258_v1, %v1259_v2 }
 0x11d   : > { %1082 = vst.msk [vmem:[#allocation3 + $0x11] sm:$0xff] %vm417_vm7, %v1073_v52  ;;  %v1042_v53 = vmul.f32 %v2379_v12, %v1030_v6 }
 0x11e   : > { %v912_v55 = vpop.f32.mrf.mxu2 }
 0x11f   : > { %v1054_v35 = vadd.f32 %v2389_v62, %v1042_v53  ;;  %v929_v56 = vadd.f32 %v912_v55, %v883_v34  ;;  %v966_v51 = vpop.f32.mrf.mxu3  ;;  %v885_v53 = vadd.f32 %v871_v29, %v823_v45  ;;  %v761_v29 = vadd.f32 %v2318_v41, %v703_v57 }
 0x120   : > { %v1014_v59 = vpop.f32.mrf.mxu0 }
 0x121   : > { %v1062_v63 = vmax.f32 %v1054_v35, 0.0  ;;  %v981_v0 = vadd.f32 %v964_v3, %v929_v56 }
 0x123   : > { %v1074_v4 = vadd.f32 %v2413_v30, %v1062_v63  ;;  %v1031_v7 = vadd.f32 %v1014_v59, %v981_v0 }
 0x124   : > { %v1092_v16 = vld [vmem:[#allocation3 + $0x10] sm:$0xff]  ;;  %v1093_v37 = vld [vmem:[#allocation3 + $0x18] sm:$0x3] }
 0x125   : > { %1083 = vst.msk [vmem:[#allocation3 + $0x21] sm:$0xff] %vm417_vm7, %v1074_v4  ;;  %v1043_v8 = vmul.f32 %v2379_v12, %v1031_v7  ;;  %v1110_v39 = vpack.c.bf16 %v1092_v16, %v1090_v5  ;;  %v1134_v18 = vrot.slane %v1092_v16, 1  ;;  %v1135_v19 = vrot.slane %v1093_v37, 1  ;;  %v873_v5 = vpop.f32.mrf.mxu1 }
 0x126   : > { %v914_v24 = vpop.f32.mrf.mxu2  ;;  %v1261_v21 = vrot.slane %v1092_v16, 2  ;;  %v1262_v27 = vrot.slane %v1093_v37, 2  ;;  %v886_v2 = vadd.f32 %v873_v5, %v824_v32 }
 0x127   : > { %v1055_v36 = vadd.f32 %v2389_v62, %v1043_v8  ;;  %v930_v38 = vadd.f32 %v914_v24, %v884_v9  ;;  %1866 = vmatmul.msk.bf16.vlgmr.msrb.gmra.mxu2 %vm417_vm7, %v1110_v39  ;;  %v2438_v3 = vsel %vm486_vm4, %v1134_v18, %v1135_v19  ;;  %v969_v52 = vpop.f32.mrf.mxu3 }
 0x128   : > { %v1016_v58 = vpop.f32.mrf.mxu0  ;;  %v1163_v46 = vpack.c.bf16 %v2438_v3, %v1133_v17  ;;  %v2443_v60 = vsel %vm614_vm5, %v1261_v21, %v1262_v27  ;;  %v612_v17 = vadd.f32 %v2275_v11, %v2280_v13 }
 0x129   : > { %v1063_v47 = vmax.f32 %v1055_v36, 0.0  ;;  %v982_v48 = vadd.f32 %v966_v51, %v930_v38  ;;  %v1290_v49 = vpack.c.bf16 %v2443_v60, %v1260_v28  ;;  %v825_v38 = vadd.f32 %v2326_v23, %v761_v29 }
 0x12a   : > { %1862 = vmatmul.msk.bf16.vlgmr.msra.gmra.mxu1 %vm417_vm7, %v1163_v46  ;;  %v704_v21 = vadd.f32 %v2336_v50, %v612_v17 }
 0x12b   : > { %v1075_v6 = vadd.f32 %v2413_v30, %v1063_v47  ;;  %v1032_v25 = vadd.f32 %v1016_v58, %v982_v48  ;;  %1871 = vmatmul.msk.bf16.vlgmr.msrb.gmra.mxu3 %vm417_vm7, %v1290_v49 }
 0x12c   : > { %v1094_v34 = vld [vmem:[#allocation3 + $0x20] sm:$0xff]  ;;  %v1095_v59 = vld [vmem:[#allocation3 + $0x28] sm:$0x3]  ;;  %v762_v47 = vadd.f32 %v2324_v22, %v704_v21  ;;  %v1885_v22 = vld [vmem:[%s2709_s2 + $0x14] sm:$0xf] }
 0x12d   : > { %1084 = vst.msk [vmem:[#allocation3 + $0x31] sm:$0xff] %vm417_vm7, %v1075_v6  ;;  %v1044_v43 = vmul.f32 %v2379_v12, %v1032_v25  ;;  %v1348_v54 = vpack.c.bf16 %v1094_v34, %v1092_v16  ;;  %v1137_v0 = vrot.slane %v1094_v34, 1  ;;  %v1138_v1 = vrot.slane %v1095_v59, 1  ;;  %v876_v41 = vpop.f32.mrf.mxu1 }
 0x12e   : > { %v917_v55 = vpop.f32.mrf.mxu2  ;;  %v1264_v14 = vrot.slane %v1094_v34, 2  ;;  %v1265_v42 = vrot.slane %v1095_v59, 2  ;;  %v887_v49 = vadd.f32 %v876_v41, %v825_v38  ;;  %v1493_v32 = vsel %vm1181_vm6, %v1885_v22, 0 }
 0x12f   : > { %v1056_v35 = vadd.f32 %v2389_v62, %v1044_v43  ;;  %v931_v56 = vadd.f32 %v917_v55, %v885_v53  ;;  %1876 = vmatmul.msk.bf16.vlgmr.msrb.gmra.mxu0 %vm417_vm7, %v1348_v54  ;;  %v971_v4 = vpop.f32.mrf.mxu3  ;;  %v2470_v24 = vsel %vm486_vm4, %v1137_v0, %v1138_v1  ;;  %v826_v53 = vadd.f32 %v2342_v33, %v762_v47  ;;  %v1890_v54 = vld [vmem:[%s2709_s2 + $0x18] sm:$0xf] }
 0x130   : > { %v1019_v26 = vpop.f32.mrf.mxu0  ;;  %v2481_v13 = vsel %vm614_vm5, %v1264_v14, %v1265_v42  ;;  %v1539_v57 = vsel %vm1181_vm6, %v1890_v54, 0  ;;  %1502 = vmatpush.bf16.msra.mxu2 %v1493_v32 }
 0x131   : > { %v1064_v51 = vmax.f32 %v1056_v35, 0.0  ;;  %v983_v61 = vadd.f32 %v969_v52, %v931_v56  ;;  %1548 = vmatpush.bf16.msra.mxu3 %v1539_v57 }
 0x133   : > { %v1076_v31 = vadd.f32 %v2413_v30, %v1064_v51  ;;  %v1033_v63 = vadd.f32 %v1019_v26, %v983_v61 }
 0x134   : > { %v1096_v7 = vld [vmem:[#allocation3 + $0x30] sm:$0xff]  ;;  %v1097_v9 = vld [vmem:[#allocation3 + $0x38] sm:$0x3] }
 0x135   : > { %1085 = vst.msk [vmem:[#allocation3 + $0x41] sm:$0xff] %vm417_vm7, %v1076_v31  ;;  %v1045_v10 = vmul.f32 %v2379_v12, %v1033_v63  ;;  %v2462_v44 = vpack.c.bf16 %v1096_v7, %v1094_v34  ;;  %v1140_v16 = vrot.slane %v1096_v7, 1  ;;  %v1141_v37 = vrot.slane %v1097_v9, 1  ;;  %v878_v55 = vpop.f32.mrf.mxu1 }
 0x136   : > { %v919_v8 = vpop.f32.mrf.mxu2  ;;  %v1267_v39 = vrot.slane %v1096_v7, 2  ;;  %v1268_v18 = vrot.slane %v1097_v9, 2  ;;  %v888_v61 = vadd.f32 %v878_v55, %v826_v53 }
 0x137   : > { %v1057_v19 = vadd.f32 %v2389_v62, %v1045_v10  ;;  %v932_v20 = vadd.f32 %v919_v8, %v886_v2  ;;  %1867 = vmatmul.msk.bf16.gmra.mxu2 %vm417_vm7, %v2462_v44  ;;  %v2473_v28 = vsel %vm486_vm4, %v1140_v16, %v1141_v37  ;;  %v974_v6 = vpop.f32.mrf.mxu3  ;;  %v1895_v8 = vld [vmem:[%s2709_s2 + $0x1c] sm:$0xf] }
 0x138   : > { %v1021_v27 = vpop.f32.mrf.mxu0  ;;  %v2478_v11 = vpack.c.bf16 %v2473_v28, %v2470_v24  ;;  %v2484_v36 = vsel %vm614_vm5, %v1267_v39, %v1268_v18 }
 0x139   : > { %v1065_v15 = vmax.f32 %v1057_v19, 0.0  ;;  %v984_v58 = vadd.f32 %v971_v4, %v932_v20  ;;  %v2489_v46 = vpack.c.bf16 %v2484_v36, %v2481_v13  ;;  %v1591_v20 = vsel %vm1181_vm6, %v1895_v8, 0 }
 0x13a   : > { %1863 = vmatmul.msk.bf16.gmra.mxu1 %vm417_vm7, %v2478_v11  ;;  %1600 = vmatpush.bf16.msra.mxu0 %v1591_v20 }
 0x13b   : > { %v1077_v50 = vadd.f32 %v2413_v30, %v1065_v15  ;;  %v1034_v45 = vadd.f32 %v1021_v27, %v984_v58  ;;  %1872 = vmatmul.msk.bf16.gmra.mxu3 %vm417_vm7, %v2489_v46 }
 0x13c   : > { %v1098_v48 = vld [vmem:[#allocation3 + $0x40] sm:$0xff]  ;;  %v1099_v43 = vld [vmem:[#allocation3 + $0x48] sm:$0x3] }
 0x13d   : > { %1086 = vst.msk [vmem:[#allocation3 + $0x51] sm:$0xff] %vm417_vm7, %v1077_v50  ;;  %v1046_v23 = vmul.f32 %v2379_v12, %v1034_v45  ;;  %v1349_v52 = vpack.c.bf16 %v1098_v48, %v1096_v7  ;;  %v1143_v59 = vrot.slane %v1098_v48, 1  ;;  %v1144_v51 = vrot.slane %v1099_v43, 1  ;;  %v1900_v45 = vld [vmem:[%s2709_s2 + $0x20] sm:$0xf] }
 0x13e   : > { %v922_v25 = vpop.f32.mrf.mxu2  ;;  %v1270_v31 = vrot.slane %v1098_v48, 2  ;;  %v1271_v63 = vrot.slane %v1099_v43, 2 }
 0x13f   : > { %v1058_v40 = vadd.f32 %v2389_v62, %v1046_v23  ;;  %v933_v34 = vadd.f32 %v922_v25, %v887_v49  ;;  %1877 = vmatmul.msk.bf16.gmra.mxu0 %vm417_vm7, %v1349_v52  ;;  %v2519_v37 = vsel %vm486_vm4, %v1143_v59, %v1144_v51  ;;  %v976_v18 = vpop.f32.mrf.mxu3 }
 0x140   : > { %v1024_v5 = vpop.f32.mrf.mxu0  ;;  %v1272_v39 = vsel %vm614_vm5, %v1270_v31, %v1271_v63  ;;  %v1474_v31 = vpack.c.bf16 %v2481_v13, %v2443_v60  ;;  %v1412_v63 = vpack.c.bf16 %v2470_v24, %v2438_v3  ;;  %v1413_v60 = vpack.c.bf16 %v2519_v37, %v2473_v28 }
 0x141   : > { %v1066_v35 = vmax.f32 %v1058_v40, 0.0  ;;  %v985_v56 = vadd.f32 %v974_v6, %v933_v34 }
 0x143   : > { %v1078_v33 = vadd.f32 %v2413_v30, %v1066_v35  ;;  %v1035_v26 = vadd.f32 %v1024_v5, %v985_v56 }
 0x144   : > { %v1100_v0 = vld [vmem:[#allocation3 + $0x50] sm:$0xff]  ;;  %v1101_v1 = vld [vmem:[#allocation3 + $0x58] sm:$0x3] }
 0x145   : > { %1087 = vst.msk [vmem:[#allocation3 + $0x61] sm:$0xff] %vm417_vm7, %v1078_v33  ;;  %v1047_v2 = vmul.f32 %v2379_v12, %v1035_v26  ;;  %v2513_v29 = vpack.c.bf16 %v1100_v0, %v1098_v48  ;;  %v1146_v4 = vrot.slane %v1100_v0, 1  ;;  %v1147_v7 = vrot.slane %v1101_v1, 1 }
 0x146   : > { %v924_v9 = vpop.f32.mrf.mxu2  ;;  %v1274_v14 = vrot.slane %v1101_v1, 2  ;;  %v1273_v42 = vrot.slane %v1100_v0, 2  ;;  %v1641_v48 = vsel %vm1181_vm6, %v1900_v45, 0 }
 0x147   : > { %v1059_v10 = vadd.f32 %v2389_v62, %v1047_v2  ;;  %v934_v16 = vadd.f32 %v924_v9, %v888_v61  ;;  %1868 = vmatmul.msk.bf16.gmra.mxu2 %vm417_vm7, %v2513_v29  ;;  %v2522_v17 = vsel %vm486_vm4, %v1146_v4, %v1147_v7  ;;  %1650 = vmatpush.bf16.msra.mxu1 %v1641_v48  ;;  %v1108_v2 = vld [vmem:[#allocation3 + $0x90] sm:$0xff] }
 0x148   : > { %v1165_v41 = vpack.c.bf16 %v2522_v17, %v2519_v37  ;;  %v1275_v19 = vsel %vm614_vm5, %v1273_v42, %v1274_v14  ;;  %v1026_v15 = vpop.f32.mrf.mxu0  ;;  %v1580_v9 = vrot.slane %v1108_v2, 1 }
 0x149   : > { %v1067_v21 = vmax.f32 %v1059_v10, 0.0  ;;  %v986_v27 = vadd.f32 %v976_v18, %v934_v16  ;;  %v2532_v38 = vpack.c.bf16 %v1275_v19, %v1272_v39 }
 0x14a   : > { %1864 = vmatmul.msk.bf16.gmra.mxu1 %vm417_vm7, %v1165_v41 }
 0x14b   : > { %v1079_v58 = vadd.f32 %v2413_v30, %v1067_v21  ;;  %v1036_v50 = vadd.f32 %v1026_v15, %v986_v27  ;;  %1873 = vmatmul.msk.bf16.gmra.mxu3 %vm417_vm7, %v2532_v38 }
 0x14c   : > { %v1102_v47 = vld [vmem:[#allocation3 + $0x60] sm:$0xff]  ;;  %v1103_v6 = vld [vmem:[#allocation3 + $0x68] sm:$0x3] }
 0x14d   : > { %1088 = vst.msk [vmem:[#allocation3 + $0x71] sm:$0xff] %vm417_vm7, %v1079_v58  ;;  %v1048_v49 = vmul.f32 %v2379_v12, %v1036_v50  ;;  %v1350_v23 = vpack.c.bf16 %v1102_v47, %v1100_v0  ;;  %v1149_v34 = vrot.slane %v1102_v47, 1  ;;  %v1150_v53 = vrot.slane %v1103_v6, 1 }
 0x14e   : > { %v1277_v22 = vrot.slane %v1103_v6, 2  ;;  %v1276_v54 = vrot.slane %v1102_v47, 2  ;;  %v1475_v0 = vpack.c.bf16 %v1272_v39, %v2484_v36 }
 0x14f   : > { %v1060_v52 = vadd.f32 %v2389_v62, %v1048_v49  ;;  %1878 = vmatmul.msk.bf16.gmra.mxu0 %vm417_vm7, %v1350_v23  ;;  %v1151_v62 = vsel %vm486_vm4, %v1149_v34, %v1150_v53 }
 0x150   : > { %v1278_v33 = vsel %vm614_vm5, %v1276_v54, %v1277_v22 }
 0x151   : > { %v1068_v25 = vmax.f32 %v1060_v52, 0.0  ;;  %v1476_v3 = vpack.c.bf16 %v1278_v33, %v1275_v19 }
 0x153   : > { %v1080_v40 = vadd.f32 %v2413_v30, %v1068_v25 }
 0x154   : > { %v1104_v5 = vld [vmem:[#allocation3 + $0x70] sm:$0xff]  ;;  %v1105_v43 = vld [vmem:[#allocation3 + $0x78] sm:$0x3] }
 0x155   : > { %1089 = vst.msk [vmem:[#allocation3 + $0x81] sm:$0xff] %vm417_vm7, %v1080_v40  ;;  %v1113_v55 = vpack.c.bf16 %v1104_v5, %v1102_v47  ;;  %v1152_v12 = vrot.slane %v1104_v5, 1  ;;  %v1153_v35 = vrot.slane %v1105_v43, 1  ;;  %v1280_v56 = vrot.slane %v1105_v43, 2 }
 0x156   : > { %v1279_v32 = vrot.slane %v1104_v5, 2 }
 0x157   : > { %1869 = vmatmul.msk.bf16.gmra.mxu2 %vm417_vm7, %v1113_v55  ;;  %v1154_v57 = vsel %vm486_vm4, %v1152_v12, %v1153_v35 }
 0x158   : > { %v1166_v30 = vpack.c.bf16 %v1154_v57, %v1151_v62  ;;  %v1281_v26 = vsel %vm614_vm5, %v1279_v32, %v1280_v56 }
 0x159   : > { %v1293_v59 = vpack.c.bf16 %v1281_v26, %v1278_v33 }
 0x15a   : > { %1865 = vmatmul.msk.bf16.gmra.mxu1 %vm417_vm7, %v1166_v30 }
 0x15b   : > { %1874 = vmatmul.msk.bf16.gmra.mxu3 %vm417_vm7, %v1293_v59 }
 0x15c   : > { %v1106_v51 = vld [vmem:[#allocation3 + $0x80] sm:$0xff]  ;;  %v1107_v24 = vld [vmem:[#allocation3 + $0x88] sm:$0x3] }
 0x15d   : > { %v1351_v61 = vpack.c.bf16 %v1106_v51, %v1104_v5  ;;  %v1471_v13 = vrot.slane %v1107_v24, 2  ;;  %v1408_v28 = vrot.slane %v1106_v51, 1  ;;  %v1409_v36 = vrot.slane %v1107_v24, 1 }
 0x15e   : > { %v1532_v10 = vpack.c.bf16 %v1108_v2, %v1106_v51 }
 0x15f   : > { %1879 = vmatmul.msk.bf16.gmra.mxu0 %vm417_vm7, %v1351_v61  ;;  %v1410_v4 = vsel %vm486_vm4, %v1408_v28, %v1409_v36 }
 0x160   : > { %v1415_v42 = vpack.c.bf16 %v1410_v4, %v1154_v57 }
 0x167   : > { %1886 = vmatmul.msk.bf16.vlgmr.msra.gmra.mxu2 %vm417_vm7, %v1474_v31 }
 0x16a   : > { %1881 = vmatmul.msk.bf16.vlgmr.msrb.gmra.mxu1 %vm417_vm7, %v1412_v63 }
 0x16b   : > { %1891 = vmatmul.msk.bf16.vlgmr.msra.gmra.mxu3 %vm417_vm7, %v2462_v44  ;;  %v1414_v44 = vpack.c.bf16 %v1151_v62, %v2522_v17 }
 0x16f   : > { %1896 = vmatmul.msk.bf16.vlgmr.msra.gmra.mxu0 %vm417_vm7, %v2478_v11  ;;  %v1470_v11 = vrot.slane %v1106_v51, 2 }
 0x171   : > { %v1472_v1 = vsel %vm614_vm5, %v1470_v11, %v1471_v13 }
 0x172   : > { %v1477_v7 = vpack.c.bf16 %v1472_v1, %v1281_v26 }
 0x177   : > { %1887 = vmatmul.msk.bf16.gmra.mxu2 %vm417_vm7, %v1475_v0 }
 0x17a   : > { %1882 = vmatmul.msk.bf16.gmra.mxu1 %vm417_vm7, %v1413_v60 }
 0x17b   : > { %1892 = vmatmul.msk.bf16.gmra.mxu3 %vm417_vm7, %v2513_v29  ;;  %v1109_v29 = vld [vmem:[#allocation3 + $0x98] sm:$0x3] }
 0x17c   : > { %v1581_v14 = vrot.slane %v1109_v29, 1  ;;  %v1631_v47 = vrot.slane %v1109_v29, 2 }
 0x17e   : > { %v1582_v16 = vsel %vm486_vm4, %v1580_v9, %v1581_v14 }
 0x17f   : > { %1897 = vmatmul.msk.bf16.gmra.mxu0 %vm417_vm7, %v1165_v41  ;;  %v1584_v37 = vpack.c.bf16 %v1582_v16, %v1410_v4 }
 0x187   : > { %1888 = vmatmul.msk.bf16.gmra.mxu2 %vm417_vm7, %v1476_v3 }
 0x18a   : > { %1883 = vmatmul.msk.bf16.gmra.mxu1 %vm417_vm7, %v1414_v44 }
 0x18b   : > { %1893 = vmatmul.msk.bf16.gmra.mxu3 %vm417_vm7, %v1113_v55 }
 0x18f   : > { %1898 = vmatmul.msk.bf16.gmra.mxu0 %vm417_vm7, %v1166_v30 }
 0x197   : > { %1889 = vmatmul.msk.bf16.gmra.mxu2 %vm417_vm7, %v1477_v7 }
 0x19a   : > { %1884 = vmatmul.msk.bf16.gmra.mxu1 %vm417_vm7, %v1415_v42 }
 0x19b   : > { %1894 = vmatmul.msk.bf16.gmra.mxu3 %vm417_vm7, %v1532_v10 }
 0x19f   : > { %1899 = vmatmul.msk.bf16.gmra.mxu0 %vm417_vm7, %v1584_v37 }
 0x1a7   : > { %v1194_v17 = vpop.f32.mrf.mxu1 }
 0x1aa   : > { %1901 = vmatmul.msk.bf16.vlgmr.msra.gmra.mxu1 %vm417_vm7, %v2489_v46  ;;  %v1238_v18 = vpop.f32.mrf.mxu2  ;;  %v1630_v46 = vrot.slane %v1108_v2, 2 }
 0x1ab   : > { %v1239_v63 = vadd.f32 %v1238_v18, %v1194_v17 }
 0x1ac   : > { %v1378_v20 = vpop.f32.mrf.mxu0 }
 0x1ae   : > { %v1320_v19 = vpop.f32.mrf.mxu3 }
 0x1af   : > { %v1196_v8 = vpop.f32.mrf.mxu1  ;;  %v1340_v60 = vadd.f32 %v1320_v19, %v1239_v63 }
 0x1b1   : > { %v1398_v13 = vadd.f32 %v1378_v20, %v1340_v60 }
 0x1b2   : > { %v1240_v21 = vpop.f32.mrf.mxu2 }
 0x1b3   : > { %v1241_v11 = vadd.f32 %v1240_v21, %v1196_v8  ;;  %v2638_v8 = vld [vmem:[%s2712_s5] ss:$0 sm:$0xff] }
 0x1b4   : > { %v1380_v50 = vpop.f32.mrf.mxu0 }
 0x1b6   : > { %v1322_v15 = vpop.f32.mrf.mxu3 }
 0x1b7   : > { %v1199_v39 = vpop.f32.mrf.mxu1 }
 0x1ba   : > { %1902 = vmatmul.msk.bf16.gmra.mxu1 %vm417_vm7, %v2532_v38  ;;  %v1243_v45 = vpop.f32.mrf.mxu2  ;;  %v1632_v38 = vsel %vm614_vm5, %v1630_v46, %v1631_v47 }
 0x1bb   : > { %v1634_v23 = vpack.c.bf16 %v1632_v38, %v1472_v1  ;;  %v1341_v1 = vadd.f32 %v1322_v15, %v1241_v11  ;;  %v1244_v4 = vadd.f32 %v1243_v45, %v1199_v39  ;;  %v2644_v15 = vld [vmem:[%s2713_s6] ss:$0 sm:$0xff] }
 0x1bc   : > { %v1383_v52 = vpop.f32.mrf.mxu0 }
 0x1bd   : > { %v1399_v7 = vadd.f32 %v1380_v50, %v1341_v1 }
 0x1be   : > { %v1325_v48 = vpop.f32.mrf.mxu3 }
 0x1bf   : > { %v2590_v41 = vpop.f32.mrf.mxu1  ;;  %v1342_v16 = vadd.f32 %v1325_v48, %v1244_v4 }
 0x1c1   : > { %v1400_v21 = vadd.f32 %v1383_v52, %v1342_v16 }
 0x1c2   : > { %v1245_v6 = vpop.f32.mrf.mxu2 }
 0x1c3   : > { %v1246_v20 = vadd.f32 %v1245_v6, %v2590_v41 }
 0x1c4   : > { %v2603_v34 = vpop.f32.mrf.mxu0 }
 0x1c6   : > { %v1327_v25 = vpop.f32.mrf.mxu3 }
 0x1c7   : > { %v2592_v27 = vpop.f32.mrf.mxu1  ;;  %v1343_v38 = vadd.f32 %v1327_v25, %v1246_v20 }
 0x1ca   : > { %1903 = vmatmul.msk.bf16.gmra.mxu1 %vm417_vm7, %v1293_v59  ;;  %v1248_v53 = vpop.f32.mrf.mxu2 }
 0x1cc   : > { %v2607_v22 = vpop.f32.mrf.mxu0 }
 0x1ce   : > { %v2605_v43 = vpop.f32.mrf.mxu3 }
 0x1cf   : > { %v2595_v58 = vpop.f32.mrf.mxu1 }
 0x1d2   : > { %v2609_v54 = vpop.f32.mrf.mxu2 }
 0x1d4   : > { %v2613_v56 = vpop.f32.mrf.mxu0 }
 0x1d6   : > { %v2611_v12 = vpop.f32.mrf.mxu3 }
 0x1d7   : > { %v2598_v49 = vpop.f32.mrf.mxu1 }
 0x1da   : > { %1904 = vmatmul.msk.bf16.gmra.mxu1 %vm417_vm7, %v1634_v23  ;;  %v2615_v32 = vpop.f32.mrf.mxu2 }
 0x1dc   : > { %v2619_v30 = vpop.f32.mrf.mxu0 }
 0x1de   : > { %v2617_v62 = vpop.f32.mrf.mxu3 }
 0x1df   : > { %v2601_v40 = vpop.f32.mrf.mxu1 }
 0x1e2   : > { %v2621_v33 = vpop.f32.mrf.mxu2 }
 0x1e4   : > { %v2627_v51 = vpop.f32.mrf.mxu0 }
 0x1e6   : > { %v2623_v26 = vpop.f32.mrf.mxu3 }
 0x1e7   : > { %v1442_v5 = vpop.f32.mrf.mxu1 }
 0x1e8   : > { %v1462_v28 = vadd.f32 %v1442_v5, %v1398_v13 }
 0x1ea   : > { %v1504_v61 = vpop.f32.mrf.mxu2 }
 0x1eb   : > { %v1524_v2 = vadd.f32 %v1504_v61, %v1462_v28  ;;  %v1401_v61 = vadd.f32 %v2603_v34, %v1343_v38  ;;  %v1251_v34 = vadd.f32 %v2609_v54, %v2595_v58 }
 0x1ec   : > { %v1602_v3 = vpop.f32.mrf.mxu0 }
 0x1ee   : > { %v1550_v0 = vpop.f32.mrf.mxu3 }
 0x1ef   : > { %v1444_v55 = vpop.f32.mrf.mxu1  ;;  %v1570_v42 = vadd.f32 %v1550_v0, %v1524_v2 }
 0x1f0   : > { %v1463_v10 = vadd.f32 %v1444_v55, %v1399_v7 }
 0x1f1   : > { %v1622_v18 = vadd.f32 %v1602_v3, %v1570_v42 }
 0x1f2   : > { %v1506_v44 = vpop.f32.mrf.mxu2 }
 0x1f3   : > { %v1525_v17 = vadd.f32 %v1506_v44, %v1463_v10 }
 0x1f4   : > { %v1604_v9 = vpop.f32.mrf.mxu0 }
 0x1f6   : > { %v1552_v36 = vpop.f32.mrf.mxu3 }
 0x1f7   : > { %v1447_v35 = vpop.f32.mrf.mxu1  ;;  %v1571_v50 = vadd.f32 %v1552_v36, %v1525_v17 }
 0x1f8   : > { %v1464_v46 = vadd.f32 %v1447_v35, %v1400_v21  ;;  %v1249_v35 = vadd.f32 %v1248_v53, %v2592_v27 }
 0x1f9   : > { %v1623_v6 = vadd.f32 %v1604_v9, %v1571_v50  ;;  %v1345_v9 = vadd.f32 %v2611_v12, %v1251_v34 }
 0x1fa   : > { %v1509_v14 = vpop.f32.mrf.mxu2  ;;  %v1344_v3 = vadd.f32 %v2605_v43, %v1249_v35 }
 0x1fb   : > { %v1526_v41 = vadd.f32 %v1509_v14, %v1464_v46  ;;  %v1403_v17 = vadd.f32 %v2613_v56, %v1345_v9  ;;  %v1256_v56 = vadd.f32 %v2621_v33, %v2601_v40 }
 0x1fc   : > { %v1607_v45 = vpop.f32.mrf.mxu0  ;;  %v1402_v53 = vadd.f32 %v2607_v22, %v1344_v3 }
 0x1fe   : > { %v1555_v37 = vpop.f32.mrf.mxu3 }
 0x1ff   : > { %v1449_v57 = vpop.f32.mrf.mxu1  ;;  %v1572_v63 = vadd.f32 %v1555_v37, %v1526_v41  ;;  %v1254_v37 = vadd.f32 %v2615_v32, %v2598_v49  ;;  %v1347_v41 = vadd.f32 %v2623_v26, %v1256_v56 }
 0x200   : > { %v1465_v0 = vadd.f32 %v1449_v57, %v1401_v61 }
 0x201   : > { %v1624_v1 = vadd.f32 %v1607_v45, %v1572_v63  ;;  %v1346_v21 = vadd.f32 %v2617_v62, %v1254_v37 }
 0x202   : > { %v1511_v48 = vpop.f32.mrf.mxu2 }
 0x203   : > { %v1527_v28 = vadd.f32 %v1511_v48, %v1465_v0  ;;  %v1404_v32 = vadd.f32 %v2619_v30, %v1346_v21 }
 0x204   : > { %v1609_v44 = vpop.f32.mrf.mxu0 }
 0x206   : > { %v1557_v5 = vpop.f32.mrf.mxu3 }
 0x207   : > { %v2625_v59 = vpop.f32.mrf.mxu1  ;;  %v1573_v4 = vadd.f32 %v1557_v5, %v1527_v28 }
 0x208   : > { %v1466_v43 = vadd.f32 %v2625_v59, %v1402_v53 }
 0x209   : > { %v1625_v58 = vadd.f32 %v1609_v44, %v1573_v4 }
 0x20a   : > { %v1514_v13 = vpop.f32.mrf.mxu2 }
 0x20b   : > { %v1528_v42 = vadd.f32 %v1514_v13, %v1466_v43 }
 0x20c   : > { %v1612_v10 = vpop.f32.mrf.mxu0 }
 0x20e   : > { %v1560_v2 = vpop.f32.mrf.mxu3 }
 0x20f   : > { %v2629_v31 = vpop.f32.mrf.mxu1 }
 0x210   : > { %v1467_v12 = vadd.f32 %v2629_v31, %v1403_v17 }
 0x212   : > { %v1516_v54 = vpop.f32.mrf.mxu2 }
 0x213   : > { %v1529_v50 = vadd.f32 %v1516_v54, %v1467_v12 }
 0x216   : > { %v1562_v20 = vpop.f32.mrf.mxu3 }
 0x217   : > { %v2631_v24 = vpop.f32.mrf.mxu1  ;;  %v1575_v38 = vadd.f32 %v1562_v20, %v1529_v50 }
 0x218   : > { %v1468_v62 = vadd.f32 %v2631_v24, %v1404_v32 }
 0x21a   : > { %v1519_v48 = vpop.f32.mrf.mxu2 }
 0x21b   : > { %v1530_v5 = vadd.f32 %v1519_v48, %v1468_v62 }
 0x21f   : > { %v2633_v29 = vpop.f32.mrf.mxu1 }
 0x222   : > { %v1521_v26 = vpop.f32.mrf.mxu2 }
 0x227   : > { %v1652_v19 = vpop.f32.mrf.mxu1 }
 0x228   : > { %v1672_v39 = vadd.f32 %v1652_v19, %v1622_v18  ;;  %v1574_v18 = vadd.f32 %v1560_v2, %v1528_v42 }
 0x22a   : > { %v1684_v47 = vmul.f32 %v2638_v8, %v1672_v39  ;;  %v1626_v45 = vadd.f32 %v1612_v10, %v1574_v18 }
 0x22c   : > { %v1696_v23 = vadd.f32 %v2644_v15, %v1684_v47  ;;  %v1614_v47 = vpop.f32.mrf.mxu0 }
 0x22d   : > { %v1627_v33 = vadd.f32 %v1614_v47, %v1575_v38 }
 0x22e   : > { %v1704_v52 = vmax.f32 %v1696_v23, 0.0 }
 0x22f   : > { %v1654_v55 = vpop.f32.mrf.mxu1 }
 0x230   : > { %1712 = vst.msk [vmem:[%s2652_s23] sm:$0xff] %vm417_vm7, %v1704_v52  ;;  %v1673_v25 = vadd.f32 %v1654_v55, %v1623_v6  ;;  %v1565_v6 = vpop.f32.mrf.mxu3  ;;  %v1405_v55 = vadd.f32 %v2627_v51, %v1347_v41 }
 0x231   : > { %v1576_v61 = vadd.f32 %v1565_v6, %v1530_v5 }
 0x232   : > { %v1685_v60 = vmul.f32 %v2638_v8, %v1673_v25  ;;  %v1469_v24 = vadd.f32 %v2633_v29, %v1405_v55 }
 0x234   : > { %v1697_v11 = vadd.f32 %v2644_v15, %v1685_v60  ;;  %v1617_v63 = vpop.f32.mrf.mxu0  ;;  %v1531_v60 = vadd.f32 %v1521_v26, %v1469_v24 }
 0x235   : > { %v1628_v44 = vadd.f32 %v1617_v63, %v1576_v61 }
 0x236   : > { %v1705_v36 = vmax.f32 %v1697_v11, 0.0 }
 0x237   : > { %v1657_v27 = vpop.f32.mrf.mxu1 }
 0x238   : > { %1713 = vst.msk [vmem:[%s2652_s23 + $0x8] sm:$0xff] %vm417_vm7, %v1705_v36  ;;  %v1674_v57 = vadd.f32 %v1657_v27, %v1624_v1  ;;  %v1567_v11 = vpop.f32.mrf.mxu3 }
 0x239   : > { %v1577_v28 = vadd.f32 %v1567_v11, %v1531_v60 }
 0x23a   : > { %v1686_v7 = vmul.f32 %v2638_v8, %v1674_v57 }
 0x23c   : > { %v1698_v14 = vadd.f32 %v2644_v15, %v1686_v7  ;;  %v1619_v1 = vpop.f32.mrf.mxu0 }
 0x23d   : > { %v1629_v34 = vadd.f32 %v1619_v1, %v1577_v28 }
 0x23e   : > { %v1706_v16 = vmax.f32 %v1698_v14, 0.0 }
 0x23f   : > { %v1659_v22 = vpop.f32.mrf.mxu1 }
 0x240   : > { %1714 = vst.msk [vmem:[%s2652_s23 + $0x10] sm:$0xff] %vm417_vm7, %v1706_v16  ;;  %v1675_v59 = vadd.f32 %v1659_v22, %v1625_v58 }
 0x242   : > { %v1687_v19 = vmul.f32 %v2638_v8, %v1675_v59 }
 0x244   : > { %v1699_v39 = vadd.f32 %v2644_v15, %v1687_v19 }
 0x246   : > { %v1707_v46 = vmax.f32 %v1699_v39, 0.0 }
 0x247   : > { %v1662_v49 = vpop.f32.mrf.mxu1 }
 0x248   : > { %1715 = vst.msk [vmem:[%s2652_s23 + $0x18] sm:$0xff] %vm417_vm7, %v1707_v46  ;;  %v1676_v31 = vadd.f32 %v1662_v49, %v1626_v45 }
 0x24a   : > { %v1688_v23 = vmul.f32 %v2638_v8, %v1676_v31 }
 0x24c   : > { %v1700_v52 = vadd.f32 %v2644_v15, %v1688_v23 }
 0x24e   : > { %v1708_v40 = vmax.f32 %v1700_v52, 0.0 }
 0x24f   : > { %v1664_v30 = vpop.f32.mrf.mxu1 }
 0x250   : > { %1716 = vst.msk [vmem:[%s2652_s23 + $0x20] sm:$0xff] %vm417_vm7, %v1708_v40  ;;  %v1677_v35 = vadd.f32 %v1664_v30, %v1627_v33 }
 0x252   : > { %v1689_v25 = vmul.f32 %v2638_v8, %v1677_v35 }
 0x254   : > { %v1701_v0 = vadd.f32 %v2644_v15, %v1689_v25 }
 0x256   : > { %v1709_v3 = vmax.f32 %v1701_v0, 0.0 }
 0x257   : > { %v1667_v13 = vpop.f32.mrf.mxu1 }
 0x258   : > { %1717 = vst.msk [vmem:[%s2652_s23 + $0x28] sm:$0xff] %vm417_vm7, %v1709_v3  ;;  %v1678_v51 = vadd.f32 %v1667_v13, %v1628_v44 }
 0x25a   : > { %v1690_v36 = vmul.f32 %v2638_v8, %v1678_v51 }
 0x25c   : > { %v1702_v29 = vadd.f32 %v2644_v15, %v1690_v36 }
 0x25e   : > { %v1710_v27 = vmax.f32 %v1702_v29, 0.0 }
 0x25f   : > { %v1669_v53 = vpop.f32.mrf.mxu1 }
 0x260   : > { %1718 = vst.msk [vmem:[%s2652_s23 + $0x30] sm:$0xff] %vm417_vm7, %v1710_v27  ;;  %v1679_v57 = vadd.f32 %v1669_v53, %v1629_v34 }
 0x262   : > { %v1691_v2 = vmul.f32 %v2638_v8, %v1679_v57 }
 0x264   : > { %v1703_v4 = vadd.f32 %v2644_v15, %v1691_v2 }
 0x266   : > { %v1711_v43 = vmax.f32 %v1703_v4, 0.0 }
 0x268   : > { %1719 = vst.msk [vmem:[%s2652_s23 + $0x38] sm:$0xff] %vm417_vm7, %v1711_v43 }
 0x269 PF: > { %s18_s27 = sadd.s32 1, %s1931_s27  }
 0x26a   : > { %p15_p4 = scmp.ge.s32.totalorder %s18_s27, 4  }
 0x26c   :  { %17 = sbr.rel (!%p15_p4) target bundleno = 1 (0x1), region = 108 }

</bundles_post_ra>
